<compile_context>
chip_gen: v5e
topology: v5e:2x2
jax: 0.10.0
libtpu: 0.0.40
codegen_flags: <defaults>
</compile_context>

<pallas_src>
import math

import jax
import jax.numpy as jnp
from jax.experimental import pallas as pl
from jax.experimental.pallas import tpu as pltpu

# ----------------------------- configuration --------------------------------
B, S, E = 2, 8, 32      # batch, seq, embedding_dim
D = 8                   # attn_head_dim
H = 4                   # num_query_heads
HKV = 2                 # num_key_value_heads (GQA)
F = 64                  # ffn_dim
LN_EPS = 1e-5           # nn.LayerNorm default eps

HD = H * D              # 32   (query lanes)
KVD = HKV * D           # 16   (key / value lanes)
QKV = HD + 2 * KVD      # 64   (fused qkv projection width)
REP = H // HKV          # 2    (query heads per KV group)

# ---- parameter slab layout (rows; lane width = W_PRM) -----------------------
W_PRM = max(QKV, F, E)            # 64
N_VEC = 10                        # bqkv1, bqkv2, b1, b2, ln{1,2,3}_{g,b}
R_WQKV1 = 0
R_WO1 = R_WQKV1 + E
R_WQKV2 = R_WO1 + HD
R_WO2 = R_WQKV2 + E
R_W1 = R_WO2 + HD
R_W2 = R_W1 + E
R_VEC = R_W2 + F
PRM_ROWS = R_VEC + N_VEC

VMEM_SPEC = pl.BlockSpec(memory_space=pltpu.MemorySpace.VMEM)


# ------------------------------ small helpers --------------------------------
def _dot(a, b):
    return jnp.dot(a, b, preferred_element_type=jnp.float32)


def _dot_nt(a, b):  # a @ b.T without materializing a transpose
    return jax.lax.dot_general(a, b, (((1,), (1,)), ((), ())),
                               preferred_element_type=jnp.float32)


def _dot_tn(a, b):  # a.T @ b
    return jax.lax.dot_general(a, b, (((0,), (0,)), ((), ())),
                               preferred_element_type=jnp.float32)


def _elu_p1(x):
    return jnp.where(x > 0, x + 1.0, jnp.exp(x))  # elu(x) + 1


def _add_layernorm(x, res, gamma, beta):
    h = x + res
    mu = jnp.mean(h, axis=-1, keepdims=True)
    var = jnp.mean((h - mu) ** 2, axis=-1, keepdims=True)
    return (h - mu) * jax.lax.rsqrt(var + LN_EPS) * gamma + beta


def _pad_lanes(a, width):
    if a.shape[1] == width:
        return a
    return jnp.concatenate(
        [a, jnp.zeros((a.shape[0], width - a.shape[1]), a.dtype)], axis=1)


# ------------------------------- fused kernel --------------------------------
def _make_decoder_block_kernel(bq, sq, sk, has_mask1, has_mask2):
    """Builds the gridless fused kernel for static (batch, seq) sizes."""
    bsq, bsk = bq * sq, bq * sk
    scale = 1.0 / math.sqrt(D)

    # activation slab row offsets (lane width = max(E, sq, sk))
    r_x = 0
    r_enc = bsq
    r_m1 = r_enc + bsk
    r_m2 = r_m1 + (bsq if has_mask1 else 0)

    ctxw = 2 * bq * HKV * D            # lane width of packed (M, z) context
    w_out = max(E, ctxw)               # output slab lane width

    def kernel(act_ref, prm_ref, out_ref):
        x0 = act_ref[r_x:r_x + bsq, 0:E]                     # (bq*sq, E)
        enc = act_ref[r_enc:r_enc + bsk, 0:E]                # (bq*sk, E)
        mask1 = act_ref[r_m1:r_m1 + bsq, 0:sq] if has_mask1 else None
        mask2 = act_ref[r_m2:r_m2 + bsq, 0:sk] if has_mask2 else None

        # all row-vector params in one load, sliced as values
        vecs = prm_ref[R_VEC:R_VEC + N_VEC, :]               # (N_VEC, W_PRM)

        def vrow(idx, width):
            return vecs[idx:idx + 1, 0:width]                # (1, width)

        def attn_sublayer(xq, xkv, r_wqkv, r_wo, bqkv, mask, skv):
            """Fused InfiniAttention sublayer (memory zero-initialized)."""
            wqkv = prm_ref[r_wqkv:r_wqkv + E, 0:QKV]         # (E, HD+2*KVD)
            if xq is xkv:                                    # self-attn: 1 matmul
                qkv = _dot(xq, wqkv) + bqkv                  # (bq*sq, QKV)
                q = qkv[:, 0:HD]
                k = qkv[:, HD:HD + KVD]
                v = qkv[:, HD + KVD:QKV]
            else:                                            # cross-attn: q + kv
                q = _dot(xq, wqkv[:, 0:HD]) + bqkv[:, 0:HD]
                kv = _dot(xkv, wqkv[:, HD:QKV]) + bqkv[:, HD:QKV]
                k = kv[:, 0:KVD]
                v = kv[:, KVD:2 * KVD]

            batch_tiles = []
            m_tiles, z_tiles = [], []                        # ordered (b, g)
            for b in range(bq):
                head_tiles = []
                mb = mask[b * sq:(b + 1) * sq, :] if mask is not None else None
                for g in range(HKV):
                    kb = k[b * skv:(b + 1) * skv, g * D:(g + 1) * D]   # (skv, D)
                    vb = v[b * skv:(b + 1) * skv, g * D:(g + 1) * D]   # (skv, D)

                    # compressive-memory update (memory zero-initialized)
                    sig_k = _elu_p1(kb)
                    m_tiles.append(_dot_tn(sig_k, vb))                 # (D, D)
                    z_tiles.append(jnp.sum(sig_k, axis=0, keepdims=True))

                    # batch the REP query heads of this KV group together
                    q_pair = jnp.concatenate(
                        [q[b * sq:(b + 1) * sq,
                           (g * REP + r) * D:(g * REP + r + 1) * D]
                         for r in range(REP)], axis=0)                 # (REP*sq, D)
                    s = _dot_nt(q_pair, kb) * scale                    # (REP*sq, skv)
                    if mb is not None:
                        s = s + jnp.concatenate([mb] * REP, axis=0)
                    s = s - jnp.max(s, axis=-1, keepdims=True)
                    p = jnp.exp(s)
                    p = p / jnp.sum(p, axis=-1, keepdims=True)         # exact softmax
                    a = _dot(p, vb)                                    # (REP*sq, D)
                    head_tiles += [a[r * sq:(r + 1) * sq, :] for r in range(REP)]
                batch_tiles.append(jnp.concatenate(head_tiles, axis=1))  # (sq, HD)
            attn_all = jnp.concatenate(batch_tiles, axis=0)              # (bq*sq, HD)

            # gate already folded into wo; single output projection,
            # use_attn_linear_bias=False -> no bias
            wo = prm_ref[r_wo:r_wo + HD, 0:E]
            return _dot(attn_all, wo), m_tiles, z_tiles

        bqkv1 = vrow(0, QKV)
        bqkv2 = vrow(1, QKV)
        b1 = vrow(2, F)
        b2 = vrow(3, E)
        ln1g, ln1b = vrow(4, E), vrow(5, E)
        ln2g, ln2b = vrow(6, E), vrow(7, E)
        ln3g, ln3b = vrow(8, E), vrow(9, E)

        # sublayer 1: masked self-attention + residual + LayerNorm (dropout=id)
        a1, m1, z1 = attn_sublayer(x0, x0, R_WQKV1, R_WO1, bqkv1, mask1, sq)
        h1 = _add_layernorm(a1, x0, ln1g, ln1b)

        # sublayer 2: encoder-decoder attention + residual + LayerNorm
        a2, m2, z2 = attn_sublayer(h1, enc, R_WQKV2, R_WO2, bqkv2, mask2, sk)
        h2 = _add_layernorm(a2, h1, ln2g, ln2b)

        # sublayer 3: position-wise FFN + residual + LayerNorm
        w1 = prm_ref[R_W1:R_W1 + E, 0:F]
        w2 = prm_ref[R_W2:R_W2 + F, 0:E]
        hid = jnp.maximum(_dot(h2, w1) + b1, 0.0)
        y = _add_layernorm(_dot(hid, w2) + b2, h2, ln3g, ln3b)

        # single dense writeback: rows [0:bsq] -> block output,
        # rows [bsq:bsq+D] -> M (both sublayers lane-packed), row [bsq+D] -> z
        m_all = jnp.concatenate(m1 + m2, axis=1)             # (D, ctxw)
        z_all = jnp.concatenate(z1 + z2, axis=1)             # (1, ctxw)
        out_ref[...] = jnp.concatenate(
            [_pad_lanes(y, w_out),
             _pad_lanes(m_all, w_out),
             _pad_lanes(z_all, w_out)], axis=0)

    return kernel, ctxw, w_out


# --------------------------------- wrapper ------------------------------------
def _pack_params(params):
    """Concatenate every weight/bias into one lane-dense (PRM_ROWS, W_PRM) slab."""
    p1, p2 = params["attn1"], params["attn2"]

    def qkv_w(p):
        return jnp.concatenate([p["wq"], p["wk"], p["wv"]], axis=1)   # (E, QKV)

    def qkv_b(p):
        return jnp.concatenate([p["bq"], p["bk"], p["bv"]], axis=1)   # (1, QKV)

    def gated_wo(p):                                  # fold (1 - sigmoid(beta)) gate
        gate = 1.0 - jax.nn.sigmoid(p["beta"])        # (H,)
        return jnp.repeat(gate, D)[:, None] * p["wo"]  # (HD, E)

    rows = [qkv_w(p1), gated_wo(p1),                  # R_WQKV1, R_WO1
            qkv_w(p2), gated_wo(p2),                  # R_WQKV2, R_WO2
            params["w1"], params["w2"],               # R_W1, R_W2
            qkv_b(p1), qkv_b(p2), params["b1"], params["b2"],
            params["ln1_g"], params["ln1_b"],
            params["ln2_g"], params["ln2_b"],
            params["ln3_g"], params["ln3_b"]]         # R_VEC .. R_VEC+9
    slab = jnp.concatenate(
        [_pad_lanes(r.astype(jnp.float32), W_PRM) for r in rows], axis=0)
    assert slab.shape == (PRM_ROWS, W_PRM)
    return slab


@jax.jit
def decoder_block(x, enc_x, params, mask=None, dec_enc_mask=None):
    bq, sq, e = x.shape
    sk = enc_x.shape[1]
    assert e == E and enc_x.shape[0] == bq and enc_x.shape[2] == E

    has_mask1 = mask is not None
    has_mask2 = dec_enc_mask is not None

    # ---- activations + masks slab (one DMA) ----
    w_act = max(E, sq, sk)
    act_rows = [x.reshape(bq * sq, E).astype(jnp.float32),
                enc_x.reshape(bq * sk, E).astype(jnp.float32)]
    if has_mask1:
        act_rows.append(mask.reshape(bq * sq, sq).astype(jnp.float32))
    if has_mask2:
        act_rows.append(dec_enc_mask.reshape(bq * sq, sk).astype(jnp.float32))
    act_slab = jnp.concatenate([_pad_lanes(r, w_act) for r in act_rows], axis=0)

    # ---- parameters slab (one DMA) ----
    prm_slab = _pack_params(params)

    kernel, ctxw, w_out = _make_decoder_block_kernel(bq, sq, sk,
                                                     has_mask1, has_mask2)
    out_rows = bq * sq + D + 1
    out_slab = pl.pallas_call(
        kernel,
        out_shape=jax.ShapeDtypeStruct((out_rows, w_out), jnp.float32),
        in_specs=[VMEM_SPEC, VMEM_SPEC],
        out_specs=VMEM_SPEC,
    )(act_slab, prm_slab)

    # ---- unpack outputs ----
    y = out_slab[0:bq * sq, 0:E].reshape(bq, sq, E)
    m_flat = out_slab[bq * sq:bq * sq + D, 0:ctxw]          # (D, 2*bq*HKV*D)
    z_flat = out_slab[bq * sq + D, 0:ctxw]                  # (2*bq*HKV*D,)

    m = m_flat.reshape(D, 2, bq, HKV, D).transpose(1, 2, 3, 0, 4)  # (2,B,HKV,D,D)
    m = jnp.repeat(m, REP, axis=2)                                 # (2,B,H,D,D)
    z = jnp.repeat(z_flat.reshape(2, bq, HKV, D), REP, axis=2)     # (2,B,H,D)

    ctx_self = (m[0], z[0])
    ctx_cross = (m[1], z[1])
    return y, (ctx_self, ctx_cross)


# ------------------------------- parameters -----------------------------------
def init_params(key):
    def w(k, shape, scale=0.02):
        return (scale * jax.random.normal(k, shape)).astype(jnp.float32)

    def attn_params(k):
        ks = jax.random.split(k, 4)
        return dict(
            wq=w(ks[0], (E, H * D)), bq=jnp.zeros((1, H * D), jnp.float32),
            wk=w(ks[1], (E, HKV * D)), bk=jnp.zeros((1, HKV * D), jnp.float32),
            wv=w(ks[2], (E, HKV * D)), bv=jnp.zeros((1, HKV * D), jnp.float32),
            # use_attn_linear_bias=False -> no bias on the output projection
            wo=w(ks[3], (H * D, E)),
            beta=jnp.zeros((H,), jnp.float32),     # memory gate, per head
        )

    ks = jax.random.split(key, 4)
    return dict(
        attn1=attn_params(ks[0]),
        attn2=attn_params(ks[1]),
        ln1_g=jnp.ones((1, E), jnp.float32), ln1_b=jnp.zeros((1, E), jnp.float32),
        ln2_g=jnp.ones((1, E), jnp.float32), ln2_b=jnp.zeros((1, E), jnp.float32),
        ln3_g=jnp.ones((1, E), jnp.float32), ln3_b=jnp.zeros((1, E), jnp.float32),
        # PositionwiseFFN (use_pffn_bias=True)
        w1=w(ks[2], (E, F)), b1=jnp.zeros((1, F), jnp.float32),
        w2=w(ks[3], (F, E)), b2=jnp.zeros((1, E), jnp.float32),
    )


# ---------------------------------- main ---------------------------------------
if __name__ == "__main__":
    key = jax.random.PRNGKey(0)
    kx, ke, kp = jax.random.split(key, 3)

    x = jax.random.normal(kx, (B, S, E), jnp.float32)
    enc_x = jax.random.normal(ke, (B, S, E), jnp.float32)
    params = init_params(kp)

    # additive causal mask for the self-attention sublayer
    causal = jnp.where(jnp.arange(S)[:, None] >= jnp.arange(S)[None, :],
                       0.0, -1e9).astype(jnp.float32)
    mask = jnp.broadcast_to(causal, (B, S, S))

    out, (ctx_self, ctx_cross) = decoder_block(x, enc_x, params,
                                               mask=mask, dec_enc_mask=None)
    jax.block_until_ready(out)

    assert out.shape == (B, S, E)
    assert ctx_self[0].shape == (B, H, D, D) and ctx_self[1].shape == (B, H, D)
    assert ctx_cross[0].shape == (B, H, D, D) and ctx_cross[1].shape == (B, H, D)
    assert bool(jnp.all(jnp.isfinite(out)))
    print("KERNEL_OK")
</pallas_src>

<mosaic_0001>
module attributes {stable_mosaic.version = 11 : i64} {
  func.func @kernel(%arg0: memref<48x32xf32, #tpu.memory_space<vmem>>, %arg1: memref<234x64xf32, #tpu.memory_space<vmem>>, %arg2: memref<25x64xf32, #tpu.memory_space<vmem>>) attributes {dimension_semantics = [], scalar_prefetch = 0 : i64, scratch_operands = 0 : i64, tpu.core_type = #tpu.core_type<tc>} {
    %c0 = arith.constant 0 : index
    %c0_0 = arith.constant 0 : index
    %0 = vector.load %arg0[%c0, %c0_0] : memref<48x32xf32, #tpu.memory_space<vmem>>, vector<16x32xf32>
    %c16 = arith.constant 16 : index
    %c0_1 = arith.constant 0 : index
    %1 = vector.load %arg0[%c16, %c0_1] : memref<48x32xf32, #tpu.memory_space<vmem>>, vector<16x32xf32>
    %c32 = arith.constant 32 : index
    %c0_2 = arith.constant 0 : index
    %2 = vector.load %arg0[%c32, %c0_2] : memref<48x32xf32, #tpu.memory_space<vmem>>, vector<16x8xf32>
    %c224 = arith.constant 224 : index
    %c0_3 = arith.constant 0 : index
    %3 = vector.load %arg1[%c224, %c0_3] : memref<234x64xf32, #tpu.memory_space<vmem>>, vector<10x64xf32>
    %4 = vector.extract_strided_slice %3 {offsets = [0, 0], sizes = [1, 64], strides = [1, 1]} : vector<10x64xf32> to vector<1x64xf32>
    %5 = vector.extract_strided_slice %3 {offsets = [1, 0], sizes = [1, 64], strides = [1, 1]} : vector<10x64xf32> to vector<1x64xf32>
    %6 = vector.extract_strided_slice %3 {offsets = [2, 0], sizes = [1, 64], strides = [1, 1]} : vector<10x64xf32> to vector<1x64xf32>
    %7 = vector.extract_strided_slice %3 {offsets = [3, 0], sizes = [1, 32], strides = [1, 1]} : vector<10x64xf32> to vector<1x32xf32>
    %8 = vector.extract_strided_slice %3 {offsets = [4, 0], sizes = [1, 32], strides = [1, 1]} : vector<10x64xf32> to vector<1x32xf32>
    %9 = vector.extract_strided_slice %3 {offsets = [5, 0], sizes = [1, 32], strides = [1, 1]} : vector<10x64xf32> to vector<1x32xf32>
    %10 = vector.extract_strided_slice %3 {offsets = [6, 0], sizes = [1, 32], strides = [1, 1]} : vector<10x64xf32> to vector<1x32xf32>
    %11 = vector.extract_strided_slice %3 {offsets = [7, 0], sizes = [1, 32], strides = [1, 1]} : vector<10x64xf32> to vector<1x32xf32>
    %12 = vector.extract_strided_slice %3 {offsets = [8, 0], sizes = [1, 32], strides = [1, 1]} : vector<10x64xf32> to vector<1x32xf32>
    %13 = vector.extract_strided_slice %3 {offsets = [9, 0], sizes = [1, 32], strides = [1, 1]} : vector<10x64xf32> to vector<1x32xf32>
    %c0_4 = arith.constant 0 : index
    %c0_5 = arith.constant 0 : index
    %14 = vector.load %arg1[%c0_4, %c0_5] : memref<234x64xf32, #tpu.memory_space<vmem>>, vector<32x64xf32>
    %cst = arith.constant dense<0.000000e+00> : vector<16x64xf32>
    %15 = tpu.matmul %0, %14, %cst {dimension_numbers = #tpu.dot_dimension_numbers<[1], [0], [0], [1], [0, 0, 1, 1], [], []>} : vector<16x32xf32>, vector<32x64xf32>, vector<16x64xf32> -> vector<16x64xf32>
    %16 = vector.broadcast %4 : vector<1x64xf32> to vector<16x64xf32>
    %17 = arith.addf %15, %16 : vector<16x64xf32>
    %18 = vector.extract_strided_slice %17 {offsets = [0, 0], sizes = [16, 32], strides = [1, 1]} : vector<16x64xf32> to vector<16x32xf32>
    %19 = vector.extract_strided_slice %17 {offsets = [0, 32], sizes = [16, 16], strides = [1, 1]} : vector<16x64xf32> to vector<16x16xf32>
    %20 = vector.extract_strided_slice %17 {offsets = [0, 48], sizes = [16, 16], strides = [1, 1]} : vector<16x64xf32> to vector<16x16xf32>
    %21 = vector.extract_strided_slice %2 {offsets = [0, 0], sizes = [8, 8], strides = [1, 1]} : vector<16x8xf32> to vector<8x8xf32>
    %22 = vector.extract_strided_slice %19 {offsets = [0, 0], sizes = [8, 8], strides = [1, 1]} : vector<16x16xf32> to vector<8x8xf32>
    %23 = vector.extract_strided_slice %20 {offsets = [0, 0], sizes = [8, 8], strides = [1, 1]} : vector<16x16xf32> to vector<8x8xf32>
    %cst_6 = arith.constant 0.000000e+00 : f32
    %24 = vector.broadcast %cst_6 : f32 to vector<8x8xf32>
    %25 = arith.cmpf ogt, %22, %24 : vector<8x8xf32>
    %cst_7 = arith.constant 1.000000e+00 : f32
    %26 = vector.broadcast %cst_7 : f32 to vector<8x8xf32>
    %27 = arith.addf %22, %26 : vector<8x8xf32>
    %28 = math.exp %22 : vector<8x8xf32>
    %29 = arith.select %25, %27, %28 : vector<8x8xi1>, vector<8x8xf32>
    %cst_8 = arith.constant dense<0.000000e+00> : vector<8x8xf32>
    %30 = tpu.matmul %29, %23, %cst_8 {dimension_numbers = #tpu.dot_dimension_numbers<[0], [0], [1], [1], [0, 1, 1, 1], [], []>} : vector<8x8xf32>, vector<8x8xf32>, vector<8x8xf32> -> vector<8x8xf32>
    %cst_9 = arith.constant dense<0.000000e+00> : vector<8xf32>
    %31 = vector.multi_reduction <add>, %29, %cst_9 [0] : vector<8x8xf32> to vector<8xf32>
    %32 = vector.shape_cast %31 : vector<8xf32> to vector<1x8xf32>
    %33 = vector.extract_strided_slice %18 {offsets = [0, 0], sizes = [8, 8], strides = [1, 1]} : vector<16x32xf32> to vector<8x8xf32>
    %34 = vector.extract_strided_slice %18 {offsets = [0, 8], sizes = [8, 8], strides = [1, 1]} : vector<16x32xf32> to vector<8x8xf32>
    %35 = tpu.concatenate %33, %34 in 0 : vector<8x8xf32>, vector<8x8xf32> -> vector<16x8xf32>
    %cst_10 = arith.constant dense<0.000000e+00> : vector<16x8xf32>
    %36 = tpu.matmul %35, %22, %cst_10 {dimension_numbers = #tpu.dot_dimension_numbers<[1], [1], [0], [0], [0, 0, 1, 0], [], []>} : vector<16x8xf32>, vector<8x8xf32>, vector<16x8xf32> -> vector<16x8xf32>
    %cst_11 = arith.constant 0.353553385 : f32
    %37 = vector.broadcast %cst_11 : f32 to vector<16x8xf32>
    %38 = arith.mulf %36, %37 : vector<16x8xf32>
    %39 = tpu.concatenate %21, %21 in 0 : vector<8x8xf32>, vector<8x8xf32> -> vector<16x8xf32>
    %40 = arith.addf %38, %39 : vector<16x8xf32>
    %cst_12 = arith.constant dense<0xFF800000> : vector<16xf32>
    %41 = vector.multi_reduction <maximumf>, %40, %cst_12 [1] : vector<16x8xf32> to vector<16xf32>
    %42 = vector.shape_cast %41 : vector<16xf32> to vector<16x1xf32>
    %43 = vector.broadcast %42 : vector<16x1xf32> to vector<16x8xf32>
    %44 = arith.subf %40, %43 : vector<16x8xf32>
    %45 = math.exp %44 : vector<16x8xf32>
    %cst_13 = arith.constant dense<0.000000e+00> : vector<16xf32>
    %46 = vector.multi_reduction <add>, %45, %cst_13 [1] : vector<16x8xf32> to vector<16xf32>
    %47 = vector.shape_cast %46 : vector<16xf32> to vector<16x1xf32>
    %48 = vector.broadcast %47 : vector<16x1xf32> to vector<16x8xf32>
    %49 = arith.divf %45, %48 : vector<16x8xf32>
    %cst_14 = arith.constant dense<0.000000e+00> : vector<16x8xf32>
    %50 = tpu.matmul %49, %23, %cst_14 {dimension_numbers = #tpu.dot_dimension_numbers<[1], [0], [0], [1], [0, 0, 1, 1], [], []>} : vector<16x8xf32>, vector<8x8xf32>, vector<16x8xf32> -> vector<16x8xf32>
    %51 = vector.extract_strided_slice %50 {offsets = [0, 0], sizes = [8, 8], strides = [1, 1]} : vector<16x8xf32> to vector<8x8xf32>
    %52 = vector.extract_strided_slice %50 {offsets = [8, 0], sizes = [8, 8], strides = [1, 1]} : vector<16x8xf32> to vector<8x8xf32>
    %53 = vector.extract_strided_slice %19 {offsets = [0, 8], sizes = [8, 8], strides = [1, 1]} : vector<16x16xf32> to vector<8x8xf32>
    %54 = vector.extract_strided_slice %20 {offsets = [0, 8], sizes = [8, 8], strides = [1, 1]} : vector<16x16xf32> to vector<8x8xf32>
    %cst_15 = arith.constant 0.000000e+00 : f32
    %55 = vector.broadcast %cst_15 : f32 to vector<8x8xf32>
    %56 = arith.cmpf ogt, %53, %55 : vector<8x8xf32>
    %cst_16 = arith.constant 1.000000e+00 : f32
    %57 = vector.broadcast %cst_16 : f32 to vector<8x8xf32>
    %58 = arith.addf %53, %57 : vector<8x8xf32>
    %59 = math.exp %53 : vector<8x8xf32>
    %60 = arith.select %56, %58, %59 : vector<8x8xi1>, vector<8x8xf32>
    %cst_17 = arith.constant dense<0.000000e+00> : vector<8x8xf32>
    %61 = tpu.matmul %60, %54, %cst_17 {dimension_numbers = #tpu.dot_dimension_numbers<[0], [0], [1], [1], [0, 1, 1, 1], [], []>} : vector<8x8xf32>, vector<8x8xf32>, vector<8x8xf32> -> vector<8x8xf32>
    %cst_18 = arith.constant dense<0.000000e+00> : vector<8xf32>
    %62 = vector.multi_reduction <add>, %60, %cst_18 [0] : vector<8x8xf32> to vector<8xf32>
    %63 = vector.shape_cast %62 : vector<8xf32> to vector<1x8xf32>
    %64 = vector.extract_strided_slice %18 {offsets = [0, 16], sizes = [8, 8], strides = [1, 1]} : vector<16x32xf32> to vector<8x8xf32>
    %65 = vector.extract_strided_slice %18 {offsets = [0, 24], sizes = [8, 8], strides = [1, 1]} : vector<16x32xf32> to vector<8x8xf32>
    %66 = tpu.concatenate %64, %65 in 0 : vector<8x8xf32>, vector<8x8xf32> -> vector<16x8xf32>
    %cst_19 = arith.constant dense<0.000000e+00> : vector<16x8xf32>
    %67 = tpu.matmul %66, %53, %cst_19 {dimension_numbers = #tpu.dot_dimension_numbers<[1], [1], [0], [0], [0, 0, 1, 0], [], []>} : vector<16x8xf32>, vector<8x8xf32>, vector<16x8xf32> -> vector<16x8xf32>
    %cst_20 = arith.constant 0.353553385 : f32
    %68 = vector.broadcast %cst_20 : f32 to vector<16x8xf32>
    %69 = arith.mulf %67, %68 : vector<16x8xf32>
    %70 = tpu.concatenate %21, %21 in 0 : vector<8x8xf32>, vector<8x8xf32> -> vector<16x8xf32>
    %71 = arith.addf %69, %70 : vector<16x8xf32>
    %cst_21 = arith.constant dense<0xFF800000> : vector<16xf32>
    %72 = vector.multi_reduction <maximumf>, %71, %cst_21 [1] : vector<16x8xf32> to vector<16xf32>
    %73 = vector.shape_cast %72 : vector<16xf32> to vector<16x1xf32>
    %74 = vector.broadcast %73 : vector<16x1xf32> to vector<16x8xf32>
    %75 = arith.subf %71, %74 : vector<16x8xf32>
    %76 = math.exp %75 : vector<16x8xf32>
    %cst_22 = arith.constant dense<0.000000e+00> : vector<16xf32>
    %77 = vector.multi_reduction <add>, %76, %cst_22 [1] : vector<16x8xf32> to vector<16xf32>
    %78 = vector.shape_cast %77 : vector<16xf32> to vector<16x1xf32>
    %79 = vector.broadcast %78 : vector<16x1xf32> to vector<16x8xf32>
    %80 = arith.divf %76, %79 : vector<16x8xf32>
    %cst_23 = arith.constant dense<0.000000e+00> : vector<16x8xf32>
    %81 = tpu.matmul %80, %54, %cst_23 {dimension_numbers = #tpu.dot_dimension_numbers<[1], [0], [0], [1], [0, 0, 1, 1], [], []>} : vector<16x8xf32>, vector<8x8xf32>, vector<16x8xf32> -> vector<16x8xf32>
    %82 = vector.extract_strided_slice %81 {offsets = [0, 0], sizes = [8, 8], strides = [1, 1]} : vector<16x8xf32> to vector<8x8xf32>
    %83 = vector.extract_strided_slice %81 {offsets = [8, 0], sizes = [8, 8], strides = [1, 1]} : vector<16x8xf32> to vector<8x8xf32>
    %84 = tpu.concatenate %51, %52, %82, %83 in 1 : vector<8x8xf32>, vector<8x8xf32>, vector<8x8xf32>, vector<8x8xf32> -> vector<8x32xf32>
    %85 = vector.extract_strided_slice %2 {offsets = [8, 0], sizes = [8, 8], strides = [1, 1]} : vector<16x8xf32> to vector<8x8xf32>
    %86 = vector.extract_strided_slice %19 {offsets = [8, 0], sizes = [8, 8], strides = [1, 1]} : vector<16x16xf32> to vector<8x8xf32>
    %87 = vector.extract_strided_slice %20 {offsets = [8, 0], sizes = [8, 8], strides = [1, 1]} : vector<16x16xf32> to vector<8x8xf32>
    %cst_24 = arith.constant 0.000000e+00 : f32
    %88 = vector.broadcast %cst_24 : f32 to vector<8x8xf32>
    %89 = arith.cmpf ogt, %86, %88 : vector<8x8xf32>
    %cst_25 = arith.constant 1.000000e+00 : f32
    %90 = vector.broadcast %cst_25 : f32 to vector<8x8xf32>
    %91 = arith.addf %86, %90 : vector<8x8xf32>
    %92 = math.exp %86 : vector<8x8xf32>
    %93 = arith.select %89, %91, %92 : vector<8x8xi1>, vector<8x8xf32>
    %cst_26 = arith.constant dense<0.000000e+00> : vector<8x8xf32>
    %94 = tpu.matmul %93, %87, %cst_26 {dimension_numbers = #tpu.dot_dimension_numbers<[0], [0], [1], [1], [0, 1, 1, 1], [], []>} : vector<8x8xf32>, vector<8x8xf32>, vector<8x8xf32> -> vector<8x8xf32>
    %cst_27 = arith.constant dense<0.000000e+00> : vector<8xf32>
    %95 = vector.multi_reduction <add>, %93, %cst_27 [0] : vector<8x8xf32> to vector<8xf32>
    %96 = vector.shape_cast %95 : vector<8xf32> to vector<1x8xf32>
    %97 = vector.extract_strided_slice %18 {offsets = [8, 0], sizes = [8, 8], strides = [1, 1]} : vector<16x32xf32> to vector<8x8xf32>
    %98 = vector.extract_strided_slice %18 {offsets = [8, 8], sizes = [8, 8], strides = [1, 1]} : vector<16x32xf32> to vector<8x8xf32>
    %99 = tpu.concatenate %97, %98 in 0 : vector<8x8xf32>, vector<8x8xf32> -> vector<16x8xf32>
    %cst_28 = arith.constant dense<0.000000e+00> : vector<16x8xf32>
    %100 = tpu.matmul %99, %86, %cst_28 {dimension_numbers = #tpu.dot_dimension_numbers<[1], [1], [0], [0], [0, 0, 1, 0], [], []>} : vector<16x8xf32>, vector<8x8xf32>, vector<16x8xf32> -> vector<16x8xf32>
    %cst_29 = arith.constant 0.353553385 : f32
    %101 = vector.broadcast %cst_29 : f32 to vector<16x8xf32>
    %102 = arith.mulf %100, %101 : vector<16x8xf32>
    %103 = tpu.concatenate %85, %85 in 0 : vector<8x8xf32>, vector<8x8xf32> -> vector<16x8xf32>
    %104 = arith.addf %102, %103 : vector<16x8xf32>
    %cst_30 = arith.constant dense<0xFF800000> : vector<16xf32>
    %105 = vector.multi_reduction <maximumf>, %104, %cst_30 [1] : vector<16x8xf32> to vector<16xf32>
    %106 = vector.shape_cast %105 : vector<16xf32> to vector<16x1xf32>
    %107 = vector.broadcast %106 : vector<16x1xf32> to vector<16x8xf32>
    %108 = arith.subf %104, %107 : vector<16x8xf32>
    %109 = math.exp %108 : vector<16x8xf32>
    %cst_31 = arith.constant dense<0.000000e+00> : vector<16xf32>
    %110 = vector.multi_reduction <add>, %109, %cst_31 [1] : vector<16x8xf32> to vector<16xf32>
    %111 = vector.shape_cast %110 : vector<16xf32> to vector<16x1xf32>
    %112 = vector.broadcast %111 : vector<16x1xf32> to vector<16x8xf32>
    %113 = arith.divf %109, %112 : vector<16x8xf32>
    %cst_32 = arith.constant dense<0.000000e+00> : vector<16x8xf32>
    %114 = tpu.matmul %113, %87, %cst_32 {dimension_numbers = #tpu.dot_dimension_numbers<[1], [0], [0], [1], [0, 0, 1, 1], [], []>} : vector<16x8xf32>, vector<8x8xf32>, vector<16x8xf32> -> vector<16x8xf32>
    %115 = vector.extract_strided_slice %114 {offsets = [0, 0], sizes = [8, 8], strides = [1, 1]} : vector<16x8xf32> to vector<8x8xf32>
    %116 = vector.extract_strided_slice %114 {offsets = [8, 0], sizes = [8, 8], strides = [1, 1]} : vector<16x8xf32> to vector<8x8xf32>
    %117 = vector.extract_strided_slice %19 {offsets = [8, 8], sizes = [8, 8], strides = [1, 1]} : vector<16x16xf32> to vector<8x8xf32>
    %118 = vector.extract_strided_slice %20 {offsets = [8, 8], sizes = [8, 8], strides = [1, 1]} : vector<16x16xf32> to vector<8x8xf32>
    %cst_33 = arith.constant 0.000000e+00 : f32
    %119 = vector.broadcast %cst_33 : f32 to vector<8x8xf32>
    %120 = arith.cmpf ogt, %117, %119 : vector<8x8xf32>
    %cst_34 = arith.constant 1.000000e+00 : f32
    %121 = vector.broadcast %cst_34 : f32 to vector<8x8xf32>
    %122 = arith.addf %117, %121 : vector<8x8xf32>
    %123 = math.exp %117 : vector<8x8xf32>
    %124 = arith.select %120, %122, %123 : vector<8x8xi1>, vector<8x8xf32>
    %cst_35 = arith.constant dense<0.000000e+00> : vector<8x8xf32>
    %125 = tpu.matmul %124, %118, %cst_35 {dimension_numbers = #tpu.dot_dimension_numbers<[0], [0], [1], [1], [0, 1, 1, 1], [], []>} : vector<8x8xf32>, vector<8x8xf32>, vector<8x8xf32> -> vector<8x8xf32>
    %cst_36 = arith.constant dense<0.000000e+00> : vector<8xf32>
    %126 = vector.multi_reduction <add>, %124, %cst_36 [0] : vector<8x8xf32> to vector<8xf32>
    %127 = vector.shape_cast %126 : vector<8xf32> to vector<1x8xf32>
    %128 = vector.extract_strided_slice %18 {offsets = [8, 16], sizes = [8, 8], strides = [1, 1]} : vector<16x32xf32> to vector<8x8xf32>
    %129 = vector.extract_strided_slice %18 {offsets = [8, 24], sizes = [8, 8], strides = [1, 1]} : vector<16x32xf32> to vector<8x8xf32>
    %130 = tpu.concatenate %128, %129 in 0 : vector<8x8xf32>, vector<8x8xf32> -> vector<16x8xf32>
    %cst_37 = arith.constant dense<0.000000e+00> : vector<16x8xf32>
    %131 = tpu.matmul %130, %117, %cst_37 {dimension_numbers = #tpu.dot_dimension_numbers<[1], [1], [0], [0], [0, 0, 1, 0], [], []>} : vector<16x8xf32>, vector<8x8xf32>, vector<16x8xf32> -> vector<16x8xf32>
    %cst_38 = arith.constant 0.353553385 : f32
    %132 = vector.broadcast %cst_38 : f32 to vector<16x8xf32>
    %133 = arith.mulf %131, %132 : vector<16x8xf32>
    %134 = tpu.concatenate %85, %85 in 0 : vector<8x8xf32>, vector<8x8xf32> -> vector<16x8xf32>
    %135 = arith.addf %133, %134 : vector<16x8xf32>
    %cst_39 = arith.constant dense<0xFF800000> : vector<16xf32>
    %136 = vector.multi_reduction <maximumf>, %135, %cst_39 [1] : vector<16x8xf32> to vector<16xf32>
    %137 = vector.shape_cast %136 : vector<16xf32> to vector<16x1xf32>
    %138 = vector.broadcast %137 : vector<16x1xf32> to vector<16x8xf32>
    %139 = arith.subf %135, %138 : vector<16x8xf32>
    %140 = math.exp %139 : vector<16x8xf32>
    %cst_40 = arith.constant dense<0.000000e+00> : vector<16xf32>
    %141 = vector.multi_reduction <add>, %140, %cst_40 [1] : vector<16x8xf32> to vector<16xf32>
    %142 = vector.shape_cast %141 : vector<16xf32> to vector<16x1xf32>
    %143 = vector.broadcast %142 : vector<16x1xf32> to vector<16x8xf32>
    %144 = arith.divf %140, %143 : vector<16x8xf32>
    %cst_41 = arith.constant dense<0.000000e+00> : vector<16x8xf32>
    %145 = tpu.matmul %144, %118, %cst_41 {dimension_numbers = #tpu.dot_dimension_numbers<[1], [0], [0], [1], [0, 0, 1, 1], [], []>} : vector<16x8xf32>, vector<8x8xf32>, vector<16x8xf32> -> vector<16x8xf32>
    %146 = vector.extract_strided_slice %145 {offsets = [0, 0], sizes = [8, 8], strides = [1, 1]} : vector<16x8xf32> to vector<8x8xf32>
    %147 = vector.extract_strided_slice %145 {offsets = [8, 0], sizes = [8, 8], strides = [1, 1]} : vector<16x8xf32> to vector<8x8xf32>
    %148 = tpu.concatenate %115, %116, %146, %147 in 1 : vector<8x8xf32>, vector<8x8xf32>, vector<8x8xf32>, vector<8x8xf32> -> vector<8x32xf32>
    %149 = tpu.concatenate %84, %148 in 0 : vector<8x32xf32>, vector<8x32xf32> -> vector<16x32xf32>
    %c32_42 = arith.constant 32 : index
    %c0_43 = arith.constant 0 : index
    %150 = vector.load %arg1[%c32_42, %c0_43] : memref<234x64xf32, #tpu.memory_space<vmem>>, vector<32x32xf32>
    %cst_44 = arith.constant dense<0.000000e+00> : vector<16x32xf32>
    %151 = tpu.matmul %149, %150, %cst_44 {dimension_numbers = #tpu.dot_dimension_numbers<[1], [0], [0], [1], [0, 0, 1, 1], [], []>} : vector<16x32xf32>, vector<32x32xf32>, vector<16x32xf32> -> vector<16x32xf32>
    %152 = arith.addf %151, %0 : vector<16x32xf32>
    %cst_45 = arith.constant dense<0.000000e+00> : vector<16xf32>
    %153 = vector.multi_reduction <add>, %152, %cst_45 [1] : vector<16x32xf32> to vector<16xf32>
    %154 = vector.shape_cast %153 : vector<16xf32> to vector<16x1xf32>
    %cst_46 = arith.constant 3.200000e+01 : f32
    %155 = vector.broadcast %cst_46 : f32 to vector<16x1xf32>
    %156 = arith.divf %154, %155 : vector<16x1xf32>
    %157 = vector.broadcast %156 : vector<16x1xf32> to vector<16x32xf32>
    %158 = arith.subf %152, %157 : vector<16x32xf32>
    %159 = arith.mulf %158, %158 : vector<16x32xf32>
    %cst_47 = arith.constant dense<0.000000e+00> : vector<16xf32>
    %160 = vector.multi_reduction <add>, %159, %cst_47 [1] : vector<16x32xf32> to vector<16xf32>
    %161 = vector.shape_cast %160 : vector<16xf32> to vector<16x1xf32>
    %cst_48 = arith.constant 3.200000e+01 : f32
    %162 = vector.broadcast %cst_48 : f32 to vector<16x1xf32>
    %163 = arith.divf %161, %162 : vector<16x1xf32>
    %164 = vector.broadcast %156 : vector<16x1xf32> to vector<16x32xf32>
    %165 = arith.subf %152, %164 : vector<16x32xf32>
    %cst_49 = arith.constant 9.99999974E-6 : f32
    %166 = vector.broadcast %cst_49 : f32 to vector<16x1xf32>
    %167 = arith.addf %163, %166 : vector<16x1xf32>
    %168 = math.rsqrt %167 : vector<16x1xf32>
    %169 = vector.broadcast %168 : vector<16x1xf32> to vector<16x32xf32>
    %170 = arith.mulf %165, %169 : vector<16x32xf32>
    %171 = vector.broadcast %8 : vector<1x32xf32> to vector<16x32xf32>
    %172 = arith.mulf %170, %171 : vector<16x32xf32>
    %173 = vector.broadcast %9 : vector<1x32xf32> to vector<16x32xf32>
    %174 = arith.addf %172, %173 : vector<16x32xf32>
    %c64 = arith.constant 64 : index
    %c0_50 = arith.constant 0 : index
    %175 = vector.load %arg1[%c64, %c0_50] : memref<234x64xf32, #tpu.memory_space<vmem>>, vector<32x64xf32>
    %176 = vector.extract_strided_slice %175 {offsets = [0, 0], sizes = [32, 32], strides = [1, 1]} : vector<32x64xf32> to vector<32x32xf32>
    %cst_51 = arith.constant dense<0.000000e+00> : vector<16x32xf32>
    %177 = tpu.matmul %174, %176, %cst_51 {dimension_numbers = #tpu.dot_dimension_numbers<[1], [0], [0], [1], [0, 0, 1, 1], [], []>} : vector<16x32xf32>, vector<32x32xf32>, vector<16x32xf32> -> vector<16x32xf32>
    %178 = vector.extract_strided_slice %5 {offsets = [0, 0], sizes = [1, 32], strides = [1, 1]} : vector<1x64xf32> to vector<1x32xf32>
    %179 = vector.broadcast %178 : vector<1x32xf32> to vector<16x32xf32>
    %180 = arith.addf %177, %179 : vector<16x32xf32>
    %181 = vector.extract_strided_slice %175 {offsets = [0, 32], sizes = [32, 32], strides = [1, 1]} : vector<32x64xf32> to vector<32x32xf32>
    %cst_52 = arith.constant dense<0.000000e+00> : vector<16x32xf32>
    %182 = tpu.matmul %1, %181, %cst_52 {dimension_numbers = #tpu.dot_dimension_numbers<[1], [0], [0], [1], [0, 0, 1, 1], [], []>} : vector<16x32xf32>, vector<32x32xf32>, vector<16x32xf32> -> vector<16x32xf32>
    %183 = vector.extract_strided_slice %5 {offsets = [0, 32], sizes = [1, 32], strides = [1, 1]} : vector<1x64xf32> to vector<1x32xf32>
    %184 = vector.broadcast %183 : vector<1x32xf32> to vector<16x32xf32>
    %185 = arith.addf %182, %184 : vector<16x32xf32>
    %186 = vector.extract_strided_slice %185 {offsets = [0, 0], sizes = [16, 16], strides = [1, 1]} : vector<16x32xf32> to vector<16x16xf32>
    %187 = vector.extract_strided_slice %185 {offsets = [0, 16], sizes = [16, 16], strides = [1, 1]} : vector<16x32xf32> to vector<16x16xf32>
    %188 = vector.extract_strided_slice %186 {offsets = [0, 0], sizes = [8, 8], strides = [1, 1]} : vector<16x16xf32> to vector<8x8xf32>
    %189 = vector.extract_strided_slice %187 {offsets = [0, 0], sizes = [8, 8], strides = [1, 1]} : vector<16x16xf32> to vector<8x8xf32>
    %cst_53 = arith.constant 0.000000e+00 : f32
    %190 = vector.broadcast %cst_53 : f32 to vector<8x8xf32>
    %191 = arith.cmpf ogt, %188, %190 : vector<8x8xf32>
    %cst_54 = arith.constant 1.000000e+00 : f32
    %192 = vector.broadcast %cst_54 : f32 to vector<8x8xf32>
    %193 = arith.addf %188, %192 : vector<8x8xf32>
    %194 = math.exp %188 : vector<8x8xf32>
    %195 = arith.select %191, %193, %194 : vector<8x8xi1>, vector<8x8xf32>
    %cst_55 = arith.constant dense<0.000000e+00> : vector<8x8xf32>
    %196 = tpu.matmul %195, %189, %cst_55 {dimension_numbers = #tpu.dot_dimension_numbers<[0], [0], [1], [1], [0, 1, 1, 1], [], []>} : vector<8x8xf32>, vector<8x8xf32>, vector<8x8xf32> -> vector<8x8xf32>
    %cst_56 = arith.constant dense<0.000000e+00> : vector<8xf32>
    %197 = vector.multi_reduction <add>, %195, %cst_56 [0] : vector<8x8xf32> to vector<8xf32>
    %198 = vector.shape_cast %197 : vector<8xf32> to vector<1x8xf32>
    %199 = vector.extract_strided_slice %180 {offsets = [0, 0], sizes = [8, 8], strides = [1, 1]} : vector<16x32xf32> to vector<8x8xf32>
    %200 = vector.extract_strided_slice %180 {offsets = [0, 8], sizes = [8, 8], strides = [1, 1]} : vector<16x32xf32> to vector<8x8xf32>
    %201 = tpu.concatenate %199, %200 in 0 : vector<8x8xf32>, vector<8x8xf32> -> vector<16x8xf32>
    %cst_57 = arith.constant dense<0.000000e+00> : vector<16x8xf32>
    %202 = tpu.matmul %201, %188, %cst_57 {dimension_numbers = #tpu.dot_dimension_numbers<[1], [1], [0], [0], [0, 0, 1, 0], [], []>} : vector<16x8xf32>, vector<8x8xf32>, vector<16x8xf32> -> vector<16x8xf32>
    %cst_58 = arith.constant 0.353553385 : f32
    %203 = vector.broadcast %cst_58 : f32 to vector<16x8xf32>
    %204 = arith.mulf %202, %203 : vector<16x8xf32>
    %cst_59 = arith.constant dense<0xFF800000> : vector<16xf32>
    %205 = vector.multi_reduction <maximumf>, %204, %cst_59 [1] : vector<16x8xf32> to vector<16xf32>
    %206 = vector.shape_cast %205 : vector<16xf32> to vector<16x1xf32>
    %207 = vector.broadcast %206 : vector<16x1xf32> to vector<16x8xf32>
    %208 = arith.subf %204, %207 : vector<16x8xf32>
    %209 = math.exp %208 : vector<16x8xf32>
    %cst_60 = arith.constant dense<0.000000e+00> : vector<16xf32>
    %210 = vector.multi_reduction <add>, %209, %cst_60 [1] : vector<16x8xf32> to vector<16xf32>
    %211 = vector.shape_cast %210 : vector<16xf32> to vector<16x1xf32>
    %212 = vector.broadcast %211 : vector<16x1xf32> to vector<16x8xf32>
    %213 = arith.divf %209, %212 : vector<16x8xf32>
    %cst_61 = arith.constant dense<0.000000e+00> : vector<16x8xf32>
    %214 = tpu.matmul %213, %189, %cst_61 {dimension_numbers = #tpu.dot_dimension_numbers<[1], [0], [0], [1], [0, 0, 1, 1], [], []>} : vector<16x8xf32>, vector<8x8xf32>, vector<16x8xf32> -> vector<16x8xf32>
    %215 = vector.extract_strided_slice %214 {offsets = [0, 0], sizes = [8, 8], strides = [1, 1]} : vector<16x8xf32> to vector<8x8xf32>
    %216 = vector.extract_strided_slice %214 {offsets = [8, 0], sizes = [8, 8], strides = [1, 1]} : vector<16x8xf32> to vector<8x8xf32>
    %217 = vector.extract_strided_slice %186 {offsets = [0, 8], sizes = [8, 8], strides = [1, 1]} : vector<16x16xf32> to vector<8x8xf32>
    %218 = vector.extract_strided_slice %187 {offsets = [0, 8], sizes = [8, 8], strides = [1, 1]} : vector<16x16xf32> to vector<8x8xf32>
    %cst_62 = arith.constant 0.000000e+00 : f32
    %219 = vector.broadcast %cst_62 : f32 to vector<8x8xf32>
    %220 = arith.cmpf ogt, %217, %219 : vector<8x8xf32>
    %cst_63 = arith.constant 1.000000e+00 : f32
    %221 = vector.broadcast %cst_63 : f32 to vector<8x8xf32>
    %222 = arith.addf %217, %221 : vector<8x8xf32>
    %223 = math.exp %217 : vector<8x8xf32>
    %224 = arith.select %220, %222, %223 : vector<8x8xi1>, vector<8x8xf32>
    %cst_64 = arith.constant dense<0.000000e+00> : vector<8x8xf32>
    %225 = tpu.matmul %224, %218, %cst_64 {dimension_numbers = #tpu.dot_dimension_numbers<[0], [0], [1], [1], [0, 1, 1, 1], [], []>} : vector<8x8xf32>, vector<8x8xf32>, vector<8x8xf32> -> vector<8x8xf32>
    %cst_65 = arith.constant dense<0.000000e+00> : vector<8xf32>
    %226 = vector.multi_reduction <add>, %224, %cst_65 [0] : vector<8x8xf32> to vector<8xf32>
    %227 = vector.shape_cast %226 : vector<8xf32> to vector<1x8xf32>
    %228 = vector.extract_strided_slice %180 {offsets = [0, 16], sizes = [8, 8], strides = [1, 1]} : vector<16x32xf32> to vector<8x8xf32>
    %229 = vector.extract_strided_slice %180 {offsets = [0, 24], sizes = [8, 8], strides = [1, 1]} : vector<16x32xf32> to vector<8x8xf32>
    %230 = tpu.concatenate %228, %229 in 0 : vector<8x8xf32>, vector<8x8xf32> -> vector<16x8xf32>
    %cst_66 = arith.constant dense<0.000000e+00> : vector<16x8xf32>
    %231 = tpu.matmul %230, %217, %cst_66 {dimension_numbers = #tpu.dot_dimension_numbers<[1], [1], [0], [0], [0, 0, 1, 0], [], []>} : vector<16x8xf32>, vector<8x8xf32>, vector<16x8xf32> -> vector<16x8xf32>
    %cst_67 = arith.constant 0.353553385 : f32
    %232 = vector.broadcast %cst_67 : f32 to vector<16x8xf32>
    %233 = arith.mulf %231, %232 : vector<16x8xf32>
    %cst_68 = arith.constant dense<0xFF800000> : vector<16xf32>
    %234 = vector.multi_reduction <maximumf>, %233, %cst_68 [1] : vector<16x8xf32> to vector<16xf32>
    %235 = vector.shape_cast %234 : vector<16xf32> to vector<16x1xf32>
    %236 = vector.broadcast %235 : vector<16x1xf32> to vector<16x8xf32>
    %237 = arith.subf %233, %236 : vector<16x8xf32>
    %238 = math.exp %237 : vector<16x8xf32>
    %cst_69 = arith.constant dense<0.000000e+00> : vector<16xf32>
    %239 = vector.multi_reduction <add>, %238, %cst_69 [1] : vector<16x8xf32> to vector<16xf32>
    %240 = vector.shape_cast %239 : vector<16xf32> to vector<16x1xf32>
    %241 = vector.broadcast %240 : vector<16x1xf32> to vector<16x8xf32>
    %242 = arith.divf %238, %241 : vector<16x8xf32>
    %cst_70 = arith.constant dense<0.000000e+00> : vector<16x8xf32>
    %243 = tpu.matmul %242, %218, %cst_70 {dimension_numbers = #tpu.dot_dimension_numbers<[1], [0], [0], [1], [0, 0, 1, 1], [], []>} : vector<16x8xf32>, vector<8x8xf32>, vector<16x8xf32> -> vector<16x8xf32>
    %244 = vector.extract_strided_slice %243 {offsets = [0, 0], sizes = [8, 8], strides = [1, 1]} : vector<16x8xf32> to vector<8x8xf32>
    %245 = vector.extract_strided_slice %243 {offsets = [8, 0], sizes = [8, 8], strides = [1, 1]} : vector<16x8xf32> to vector<8x8xf32>
    %246 = tpu.concatenate %215, %216, %244, %245 in 1 : vector<8x8xf32>, vector<8x8xf32>, vector<8x8xf32>, vector<8x8xf32> -> vector<8x32xf32>
    %247 = vector.extract_strided_slice %186 {offsets = [8, 0], sizes = [8, 8], strides = [1, 1]} : vector<16x16xf32> to vector<8x8xf32>
    %248 = vector.extract_strided_slice %187 {offsets = [8, 0], sizes = [8, 8], strides = [1, 1]} : vector<16x16xf32> to vector<8x8xf32>
    %cst_71 = arith.constant 0.000000e+00 : f32
    %249 = vector.broadcast %cst_71 : f32 to vector<8x8xf32>
    %250 = arith.cmpf ogt, %247, %249 : vector<8x8xf32>
    %cst_72 = arith.constant 1.000000e+00 : f32
    %251 = vector.broadcast %cst_72 : f32 to vector<8x8xf32>
    %252 = arith.addf %247, %251 : vector<8x8xf32>
    %253 = math.exp %247 : vector<8x8xf32>
    %254 = arith.select %250, %252, %253 : vector<8x8xi1>, vector<8x8xf32>
    %cst_73 = arith.constant dense<0.000000e+00> : vector<8x8xf32>
    %255 = tpu.matmul %254, %248, %cst_73 {dimension_numbers = #tpu.dot_dimension_numbers<[0], [0], [1], [1], [0, 1, 1, 1], [], []>} : vector<8x8xf32>, vector<8x8xf32>, vector<8x8xf32> -> vector<8x8xf32>
    %cst_74 = arith.constant dense<0.000000e+00> : vector<8xf32>
    %256 = vector.multi_reduction <add>, %254, %cst_74 [0] : vector<8x8xf32> to vector<8xf32>
    %257 = vector.shape_cast %256 : vector<8xf32> to vector<1x8xf32>
    %258 = vector.extract_strided_slice %180 {offsets = [8, 0], sizes = [8, 8], strides = [1, 1]} : vector<16x32xf32> to vector<8x8xf32>
    %259 = vector.extract_strided_slice %180 {offsets = [8, 8], sizes = [8, 8], strides = [1, 1]} : vector<16x32xf32> to vector<8x8xf32>
    %260 = tpu.concatenate %258, %259 in 0 : vector<8x8xf32>, vector<8x8xf32> -> vector<16x8xf32>
    %cst_75 = arith.constant dense<0.000000e+00> : vector<16x8xf32>
    %261 = tpu.matmul %260, %247, %cst_75 {dimension_numbers = #tpu.dot_dimension_numbers<[1], [1], [0], [0], [0, 0, 1, 0], [], []>} : vector<16x8xf32>, vector<8x8xf32>, vector<16x8xf32> -> vector<16x8xf32>
    %cst_76 = arith.constant 0.353553385 : f32
    %262 = vector.broadcast %cst_76 : f32 to vector<16x8xf32>
    %263 = arith.mulf %261, %262 : vector<16x8xf32>
    %cst_77 = arith.constant dense<0xFF800000> : vector<16xf32>
    %264 = vector.multi_reduction <maximumf>, %263, %cst_77 [1] : vector<16x8xf32> to vector<16xf32>
    %265 = vector.shape_cast %264 : vector<16xf32> to vector<16x1xf32>
    %266 = vector.broadcast %265 : vector<16x1xf32> to vector<16x8xf32>
    %267 = arith.subf %263, %266 : vector<16x8xf32>
    %268 = math.exp %267 : vector<16x8xf32>
    %cst_78 = arith.constant dense<0.000000e+00> : vector<16xf32>
    %269 = vector.multi_reduction <add>, %268, %cst_78 [1] : vector<16x8xf32> to vector<16xf32>
    %270 = vector.shape_cast %269 : vector<16xf32> to vector<16x1xf32>
    %271 = vector.broadcast %270 : vector<16x1xf32> to vector<16x8xf32>
    %272 = arith.divf %268, %271 : vector<16x8xf32>
    %cst_79 = arith.constant dense<0.000000e+00> : vector<16x8xf32>
    %273 = tpu.matmul %272, %248, %cst_79 {dimension_numbers = #tpu.dot_dimension_numbers<[1], [0], [0], [1], [0, 0, 1, 1], [], []>} : vector<16x8xf32>, vector<8x8xf32>, vector<16x8xf32> -> vector<16x8xf32>
    %274 = vector.extract_strided_slice %273 {offsets = [0, 0], sizes = [8, 8], strides = [1, 1]} : vector<16x8xf32> to vector<8x8xf32>
    %275 = vector.extract_strided_slice %273 {offsets = [8, 0], sizes = [8, 8], strides = [1, 1]} : vector<16x8xf32> to vector<8x8xf32>
    %276 = vector.extract_strided_slice %186 {offsets = [8, 8], sizes = [8, 8], strides = [1, 1]} : vector<16x16xf32> to vector<8x8xf32>
    %277 = vector.extract_strided_slice %187 {offsets = [8, 8], sizes = [8, 8], strides = [1, 1]} : vector<16x16xf32> to vector<8x8xf32>
    %cst_80 = arith.constant 0.000000e+00 : f32
    %278 = vector.broadcast %cst_80 : f32 to vector<8x8xf32>
    %279 = arith.cmpf ogt, %276, %278 : vector<8x8xf32>
    %cst_81 = arith.constant 1.000000e+00 : f32
    %280 = vector.broadcast %cst_81 : f32 to vector<8x8xf32>
    %281 = arith.addf %276, %280 : vector<8x8xf32>
    %282 = math.exp %276 : vector<8x8xf32>
    %283 = arith.select %279, %281, %282 : vector<8x8xi1>, vector<8x8xf32>
    %cst_82 = arith.constant dense<0.000000e+00> : vector<8x8xf32>
    %284 = tpu.matmul %283, %277, %cst_82 {dimension_numbers = #tpu.dot_dimension_numbers<[0], [0], [1], [1], [0, 1, 1, 1], [], []>} : vector<8x8xf32>, vector<8x8xf32>, vector<8x8xf32> -> vector<8x8xf32>
    %cst_83 = arith.constant dense<0.000000e+00> : vector<8xf32>
    %285 = vector.multi_reduction <add>, %283, %cst_83 [0] : vector<8x8xf32> to vector<8xf32>
    %286 = vector.shape_cast %285 : vector<8xf32> to vector<1x8xf32>
    %287 = vector.extract_strided_slice %180 {offsets = [8, 16], sizes = [8, 8], strides = [1, 1]} : vector<16x32xf32> to vector<8x8xf32>
    %288 = vector.extract_strided_slice %180 {offsets = [8, 24], sizes = [8, 8], strides = [1, 1]} : vector<16x32xf32> to vector<8x8xf32>
    %289 = tpu.concatenate %287, %288 in 0 : vector<8x8xf32>, vector<8x8xf32> -> vector<16x8xf32>
    %cst_84 = arith.constant dense<0.000000e+00> : vector<16x8xf32>
    %290 = tpu.matmul %289, %276, %cst_84 {dimension_numbers = #tpu.dot_dimension_numbers<[1], [1], [0], [0], [0, 0, 1, 0], [], []>} : vector<16x8xf32>, vector<8x8xf32>, vector<16x8xf32> -> vector<16x8xf32>
    %cst_85 = arith.constant 0.353553385 : f32
    %291 = vector.broadcast %cst_85 : f32 to vector<16x8xf32>
    %292 = arith.mulf %290, %291 : vector<16x8xf32>
    %cst_86 = arith.constant dense<0xFF800000> : vector<16xf32>
    %293 = vector.multi_reduction <maximumf>, %292, %cst_86 [1] : vector<16x8xf32> to vector<16xf32>
    %294 = vector.shape_cast %293 : vector<16xf32> to vector<16x1xf32>
    %295 = vector.broadcast %294 : vector<16x1xf32> to vector<16x8xf32>
    %296 = arith.subf %292, %295 : vector<16x8xf32>
    %297 = math.exp %296 : vector<16x8xf32>
    %cst_87 = arith.constant dense<0.000000e+00> : vector<16xf32>
    %298 = vector.multi_reduction <add>, %297, %cst_87 [1] : vector<16x8xf32> to vector<16xf32>
    %299 = vector.shape_cast %298 : vector<16xf32> to vector<16x1xf32>
    %300 = vector.broadcast %299 : vector<16x1xf32> to vector<16x8xf32>
    %301 = arith.divf %297, %300 : vector<16x8xf32>
    %cst_88 = arith.constant dense<0.000000e+00> : vector<16x8xf32>
    %302 = tpu.matmul %301, %277, %cst_88 {dimension_numbers = #tpu.dot_dimension_numbers<[1], [0], [0], [1], [0, 0, 1, 1], [], []>} : vector<16x8xf32>, vector<8x8xf32>, vector<16x8xf32> -> vector<16x8xf32>
    %303 = vector.extract_strided_slice %302 {offsets = [0, 0], sizes = [8, 8], strides = [1, 1]} : vector<16x8xf32> to vector<8x8xf32>
    %304 = vector.extract_strided_slice %302 {offsets = [8, 0], sizes = [8, 8], strides = [1, 1]} : vector<16x8xf32> to vector<8x8xf32>
    %305 = tpu.concatenate %274, %275, %303, %304 in 1 : vector<8x8xf32>, vector<8x8xf32>, vector<8x8xf32>, vector<8x8xf32> -> vector<8x32xf32>
    %306 = tpu.concatenate %246, %305 in 0 : vector<8x32xf32>, vector<8x32xf32> -> vector<16x32xf32>
    %c96 = arith.constant 96 : index
    %c0_89 = arith.constant 0 : index
    %307 = vector.load %arg1[%c96, %c0_89] : memref<234x64xf32, #tpu.memory_space<vmem>>, vector<32x32xf32>
    %cst_90 = arith.constant dense<0.000000e+00> : vector<16x32xf32>
    %308 = tpu.matmul %306, %307, %cst_90 {dimension_numbers = #tpu.dot_dimension_numbers<[1], [0], [0], [1], [0, 0, 1, 1], [], []>} : vector<16x32xf32>, vector<32x32xf32>, vector<16x32xf32> -> vector<16x32xf32>
    %309 = arith.addf %308, %174 : vector<16x32xf32>
    %cst_91 = arith.constant dense<0.000000e+00> : vector<16xf32>
    %310 = vector.multi_reduction <add>, %309, %cst_91 [1] : vector<16x32xf32> to vector<16xf32>
    %311 = vector.shape_cast %310 : vector<16xf32> to vector<16x1xf32>
    %cst_92 = arith.constant 3.200000e+01 : f32
    %312 = vector.broadcast %cst_92 : f32 to vector<16x1xf32>
    %313 = arith.divf %311, %312 : vector<16x1xf32>
    %314 = vector.broadcast %313 : vector<16x1xf32> to vector<16x32xf32>
    %315 = arith.subf %309, %314 : vector<16x32xf32>
    %316 = arith.mulf %315, %315 : vector<16x32xf32>
    %cst_93 = arith.constant dense<0.000000e+00> : vector<16xf32>
    %317 = vector.multi_reduction <add>, %316, %cst_93 [1] : vector<16x32xf32> to vector<16xf32>
    %318 = vector.shape_cast %317 : vector<16xf32> to vector<16x1xf32>
    %cst_94 = arith.constant 3.200000e+01 : f32
    %319 = vector.broadcast %cst_94 : f32 to vector<16x1xf32>
    %320 = arith.divf %318, %319 : vector<16x1xf32>
    %321 = vector.broadcast %313 : vector<16x1xf32> to vector<16x32xf32>
    %322 = arith.subf %309, %321 : vector<16x32xf32>
    %cst_95 = arith.constant 9.99999974E-6 : f32
    %323 = vector.broadcast %cst_95 : f32 to vector<16x1xf32>
    %324 = arith.addf %320, %323 : vector<16x1xf32>
    %325 = math.rsqrt %324 : vector<16x1xf32>
    %326 = vector.broadcast %325 : vector<16x1xf32> to vector<16x32xf32>
    %327 = arith.mulf %322, %326 : vector<16x32xf32>
    %328 = vector.broadcast %10 : vector<1x32xf32> to vector<16x32xf32>
    %329 = arith.mulf %327, %328 : vector<16x32xf32>
    %330 = vector.broadcast %11 : vector<1x32xf32> to vector<16x32xf32>
    %331 = arith.addf %329, %330 : vector<16x32xf32>
    %c128 = arith.constant 128 : index
    %c0_96 = arith.constant 0 : index
    %332 = vector.load %arg1[%c128, %c0_96] : memref<234x64xf32, #tpu.memory_space<vmem>>, vector<32x64xf32>
    %c160 = arith.constant 160 : index
    %c0_97 = arith.constant 0 : index
    %333 = vector.load %arg1[%c160, %c0_97] : memref<234x64xf32, #tpu.memory_space<vmem>>, vector<64x32xf32>
    %cst_98 = arith.constant dense<0.000000e+00> : vector<16x64xf32>
    %334 = tpu.matmul %331, %332, %cst_98 {dimension_numbers = #tpu.dot_dimension_numbers<[1], [0], [0], [1], [0, 0, 1, 1], [], []>} : vector<16x32xf32>, vector<32x64xf32>, vector<16x64xf32> -> vector<16x64xf32>
    %335 = vector.broadcast %6 : vector<1x64xf32> to vector<16x64xf32>
    %336 = arith.addf %334, %335 : vector<16x64xf32>
    %cst_99 = arith.constant 0.000000e+00 : f32
    %337 = vector.broadcast %cst_99 : f32 to vector<16x64xf32>
    %338 = arith.maximumf %336, %337 : vector<16x64xf32>
    %cst_100 = arith.constant dense<0.000000e+00> : vector<16x32xf32>
    %339 = tpu.matmul %338, %333, %cst_100 {dimension_numbers = #tpu.dot_dimension_numbers<[1], [0], [0], [1], [0, 0, 1, 1], [], []>} : vector<16x64xf32>, vector<64x32xf32>, vector<16x32xf32> -> vector<16x32xf32>
    %340 = vector.broadcast %7 : vector<1x32xf32> to vector<16x32xf32>
    %341 = arith.addf %339, %340 : vector<16x32xf32>
    %342 = arith.addf %341, %331 : vector<16x32xf32>
    %cst_101 = arith.constant dense<0.000000e+00> : vector<16xf32>
    %343 = vector.multi_reduction <add>, %342, %cst_101 [1] : vector<16x32xf32> to vector<16xf32>
    %344 = vector.shape_cast %343 : vector<16xf32> to vector<16x1xf32>
    %cst_102 = arith.constant 3.200000e+01 : f32
    %345 = vector.broadcast %cst_102 : f32 to vector<16x1xf32>
    %346 = arith.divf %344, %345 : vector<16x1xf32>
    %347 = vector.broadcast %346 : vector<16x1xf32> to vector<16x32xf32>
    %348 = arith.subf %342, %347 : vector<16x32xf32>
    %349 = arith.mulf %348, %348 : vector<16x32xf32>
    %cst_103 = arith.constant dense<0.000000e+00> : vector<16xf32>
    %350 = vector.multi_reduction <add>, %349, %cst_103 [1] : vector<16x32xf32> to vector<16xf32>
    %351 = vector.shape_cast %350 : vector<16xf32> to vector<16x1xf32>
    %cst_104 = arith.constant 3.200000e+01 : f32
    %352 = vector.broadcast %cst_104 : f32 to vector<16x1xf32>
    %353 = arith.divf %351, %352 : vector<16x1xf32>
    %354 = vector.broadcast %346 : vector<16x1xf32> to vector<16x32xf32>
    %355 = arith.subf %342, %354 : vector<16x32xf32>
    %cst_105 = arith.constant 9.99999974E-6 : f32
    %356 = vector.broadcast %cst_105 : f32 to vector<16x1xf32>
    %357 = arith.addf %353, %356 : vector<16x1xf32>
    %358 = math.rsqrt %357 : vector<16x1xf32>
    %359 = vector.broadcast %358 : vector<16x1xf32> to vector<16x32xf32>
    %360 = arith.mulf %355, %359 : vector<16x32xf32>
    %361 = vector.broadcast %12 : vector<1x32xf32> to vector<16x32xf32>
    %362 = arith.mulf %360, %361 : vector<16x32xf32>
    %363 = vector.broadcast %13 : vector<1x32xf32> to vector<16x32xf32>
    %364 = arith.addf %362, %363 : vector<16x32xf32>
    %365 = tpu.concatenate %30, %61, %94, %125, %196, %225, %255, %284 in 1 : vector<8x8xf32>, vector<8x8xf32>, vector<8x8xf32>, vector<8x8xf32>, vector<8x8xf32>, vector<8x8xf32>, vector<8x8xf32>, vector<8x8xf32> -> vector<8x64xf32>
    %366 = tpu.concatenate %32, %63, %96, %127, %198, %227, %257, %286 in 1 : vector<1x8xf32>, vector<1x8xf32>, vector<1x8xf32>, vector<1x8xf32>, vector<1x8xf32>, vector<1x8xf32>, vector<1x8xf32>, vector<1x8xf32> -> vector<1x64xf32>
    %cst_106 = arith.constant 0.000000e+00 : f32
    %367 = vector.broadcast %cst_106 : f32 to vector<16x32xf32>
    %368 = tpu.concatenate %364, %367 in 1 : vector<16x32xf32>, vector<16x32xf32> -> vector<16x64xf32>
    %369 = tpu.concatenate %368, %365, %366 in 0 : vector<16x64xf32>, vector<8x64xf32>, vector<1x64xf32> -> vector<25x64xf32>
    %c0_107 = arith.constant 0 : index
    %c0_108 = arith.constant 0 : index
    %370 = vector.load %arg2[%c0_107, %c0_108] : memref<25x64xf32, #tpu.memory_space<vmem>>, vector<25x64xf32>
    tpu.vector_store %arg2[%c0_107, %c0_108], %369 {strides = array<i32>} : memref<25x64xf32, #tpu.memory_space<vmem>>, vector<25x64xf32>,
    return
  }
}

</mosaic_0001>

<bundles_post_ra>
// kernel: mul.9
= control target key start
LH: loop header
LB: loop body
LE: loop exit
PB: predicated region body
PF: predicated region fallthrough
CT: control target
= control target key end

     0   :  { %s37_s8 = smov 8   ;;  %s38_s9 = smov 16   ;;  %vm7_vm0 = vcmask 64512   ;;  %vm13_vm1 = vcmask 261312   ;;  %vm19_vm2 = vcmask 195712   ;;  %vm25_vm3 = vcmask 130112   ;;  %s55_s0 = inlined_call_operand.vmem [shape: f32[4,8], index: 0, kind: input, shape index: {}]   ;;  %s56_s1 = inlined_call_operand.vmem [shape: f32[32], index: 1, kind: output, shape index: {}]  }
   0x1   :  { %v4_v0 = vld [vmem:[%s55_s0] sm:$0xf]  ;;  %s36_s0 = smov 24  }
   0x2   :  { %5 = vst [vmem:[#allocation1] sm:$0xf] %v4_v0 }
   0x9   :  { %v10_v1 = vld [vmem:[#allocation1 + $0x3] sm:$0x1]   ;;  %v22_v2 = vld [vmem:[#allocation1 + $0x1] sm:$0x1]   ;;  %v16_v3 = vld [vmem:[#allocation1 + $0x2] sm:$0x1]  }
   0xa   :  { %11 = vrot.lane.b32.xlu0 %v10_v1, %s36_s0  ;;  %23 = vrot.lane.b32.xlu1 %v22_v2, %s37_s8  ;;  %v6_v4 = vld [vmem:[#allocation1] sm:$0x1]  }
   0xb   :  { %8 = vst.msk [vmem:[#allocation0] sm:$0x1] %vm7_vm0, %v6_v4  }
  0x12   :  { %17 = vrot.lane.b32.xlu0 %v16_v3, %s38_s9 }
  0x7c   :  { %v12_v5 = vpop.permute.xlu0 %11   ;;  %v24_v6 = vpop.permute.xlu1 %23  }
  0x7d   :  { %14 = vst.msk [vmem:[#allocation0] sm:$0x1] %vm13_vm1, %v12_v5  }
  0x84   :  { %v18_v7 = vpop.permute.xlu0 %17  }
  0x85   :  { %20 = vst.msk [vmem:[#allocation0] sm:$0x1] %vm19_vm2, %v18_v7  }
  0x86   :  { %26 = vst.msk [vmem:[#allocation0] sm:$0x1] %vm25_vm3, %v24_v6  }
  0x8d   :  { %v29_v8 = vld [vmem:[#allocation0] sm:$0x1] }
  0x8e   :  { %32 = vst [vmem:[%s56_s1] sm:$0x1] %v29_v8 }

// kernel: squeeze.5
= control target key start
LH: loop header
LB: loop body
LE: loop exit
PB: predicated region body
PF: predicated region fallthrough
CT: control target
= control target key end

     0   :  { %s86_s8 = smov 120   ;;  %s87_s9 = smov 88   ;;  %vm7_vm0 = vcmask 64512   ;;  %s125_s0 = inlined_call_operand.vmem [shape: f32[64], index: 0, kind: input, shape index: {}]   ;;  %s126_s1 = inlined_call_operand.vmem [shape: f32[2,2,2,8], index: 1, kind: output, shape index: {}]  }
   0x1   :  { %v4_v0 = vld [vmem:[%s125_s0] sm:$0x1]  ;;  %s85_s0 = smov 104   ;;  %s88_s10 = smov 96  }
   0x2   :  { %5 = vst [vmem:[#allocation1] sm:$0x1] %v4_v0  ;;  %s89_s11 = smov 112   ;;  %s90_s12 = smov 80  }
   0x3   :  { %s91_s13 = smov 72  }
   0x9   :  { %v21_v1 = vld [vmem:[#allocation1] sm:$0x1]  }
   0xa   :  { %v9_v2 = vld [vmem:[#allocation1] sm:$0x1]   ;;  %22 = vrot.lane.b32.xlu1 %v21_v1, %s85_s0 }
   0xb   :  { %10 = vrot.lane.b32.xlu0 %v9_v2, %s86_s8  ;;  %v33_v3 = vld [vmem:[#allocation1] sm:$0x1]  }
   0xc   :  { %34 = vrot.lane.b32.xlu2 %v33_v3, %s87_s9  ;;  %v27_v4 = vld [vmem:[#allocation1] sm:$0x1]  }
   0xd   :  { %v15_v5 = vld [vmem:[#allocation1] sm:$0x1]  }
   0xe   :  { %v39_v6 = vld [vmem:[#allocation1] sm:$0x1]  }
   0xf   :  { %v45_v7 = vld [vmem:[#allocation1] sm:$0x1]  }
  0x10   :  { %v6_v8 = vld [vmem:[#allocation1] sm:$0x1]  }
  0x11   :  { %8 = vst.msk [vmem:[#allocation0] sm:$0x1] %vm7_vm0, %v6_v8  }
  0x12   :  { %28 = vrot.lane.b32.xlu1 %v27_v4, %s88_s10 }
  0x13   :  { %16 = vrot.lane.b32.xlu0 %v15_v5, %s89_s11 }
  0x14   :  { %40 = vrot.lane.b32.xlu2 %v39_v6, %s90_s12 }
  0x1b   :  { %46 = vrot.lane.b32.xlu0 %v45_v7, %s91_s13 }
  0x66   :  { %v35_v9 = vpop.permute.xlu2 %34  }
  0x67   :  { %38 = vst.msk [vmem:[#allocation0 + $0x11] sm:$0x1] %vm7_vm0, %v35_v9  }
  0x6e   :  { %v41_v10 = vpop.permute.xlu2 %40  }
  0x6f   :  { %44 = vst.msk [vmem:[#allocation0 + $0x18] sm:$0x1] %vm7_vm0, %v41_v10  }
  0x7c   :  { %v23_v11 = vpop.permute.xlu1 %22  }
  0x7d   :  { %v11_v12 = vpop.permute.xlu0 %10   ;;  %26 = vst.msk [vmem:[#allocation0 + $0x9] sm:$0x1] %vm7_vm0, %v23_v11  }
  0x7e   :  { %14 = vst.msk [vmem:[#allocation0 + $0x1] sm:$0x1] %vm7_vm0, %v11_v12  }
  0x84   :  { %v29_v13 = vpop.permute.xlu1 %28  }
  0x85   :  { %v17_v14 = vpop.permute.xlu0 %16   ;;  %v53_v15 = vld [vmem:[#allocation0] sm:$0x3]  ;;  %32 = vst.msk [vmem:[#allocation0 + $0x10] sm:$0x1] %vm7_vm0, %v29_v13  }
  0x86   :  { %56 = vst [vmem:[%s126_s1] sm:$0x3] %v53_v15 }
  0x87   :  { %20 = vst.msk [vmem:[#allocation0 + $0x8] sm:$0x1] %vm7_vm0, %v17_v14  }
  0x8c   :  { %v64_v16 = vld [vmem:[#allocation0 + $0x10] sm:$0x3] }
  0x8d   :  { %v47_v17 = vpop.permute.xlu0 %46   ;;  %76 = vst [vmem:[%s126_s1 + $0x4] sm:$0x3] %v64_v16 }
  0x8e   :  { %v58_v18 = vld [vmem:[#allocation0 + $0x8] sm:$0x3]  ;;  %50 = vst.msk [vmem:[#allocation0 + $0x19] sm:$0x1] %vm7_vm0, %v47_v17  }
  0x8f   :  { %75 = vst [vmem:[%s126_s1 + $0x2] sm:$0x3] %v58_v18 }
  0x95   :  { %v70_v19 = vld [vmem:[#allocation0 + $0x18] sm:$0x3] }
  0x96   :  { %77 = vst [vmem:[%s126_s1 + $0x6] sm:$0x3] %v70_v19 }

// kernel: decoder_block.1
= control target key start
LH: loop header
LB: loop body
LE: loop exit
PB: predicated region body
PF: predicated region fallthrough
CT: control target
= control target key end

     0   :  { %vm24_vm0 = vcmask 261120   ;;  %s2243_s21 = smov 80   ;;  %s2244_s22 = smov 96   ;;  %vm99_vm2 = vcmask 64512   ;;  %s2813_s1 = inlined_call_operand.vmem [shape: f32[234,64], index: 1, kind: input, shape index: {}]   ;;  %s2814_s0 = inlined_call_operand.vmem [shape: f32[48,32], index: 0, kind: input, shape index: {}]   ;;  %s2815_s2 = inlined_call_operand.vmem [shape: f32[25,64], index: 2, kind: output, shape index: {}]  }
   0x1   :  { %v22_v0 = vld [vmem:[%s2813_s1 + $0x18] sm:$0xff]  ;;  %v21_v1 = vld [vmem:[%s2813_s1 + $0x10] sm:$0xff]  ;;  %v20_v2 = vld [vmem:[%s2813_s1 + $0x8] sm:$0xff]  ;;  %s2245_s23 = smov 72   ;;  %s2246_s24 = smov 112  }
   0x2   :  { %43 = vmatpush.msra.mxu0 %v22_v0  ;;  %v19_v3 = vld [vmem:[%s2813_s1] sm:$0xff]  ;;  %s2247_s25 = smov 88   ;;  %s2248_s26 = smov 120   ;;  %v2326_v31 = vld [vmem:[%s2814_s0 + $0x8] sm:$0xff] }
   0x3   :  { %v2288_v4 = vld [vmem:[%s2814_s0] sm:$0xff]  ;;  %s2249_s5 = smov 8   ;;  %s2250_s6 = smov 16  }
   0x4   :  { %44 = vmatpush.msra.mxu0 %v21_v1  ;;  %v2295_v5 = vld [vmem:[%s2813_s1 + $0xe0] sm:$0xff]  ;;  %s2251_s7 = smov 24   ;;  %s2254_s13 = smov 32  }
   0x5   :  { %v23_v6 = vperm.slane %v2295_v5, 0  ;;  %v15_v21 = vld [vmem:[%s2814_s0 + $0x20] sm:$0xff]  ;;  %s2255_s14 = smov 48  }
   0x6   :  { %45 = vmatpush.msra.mxu0 %v20_v2 }
   0x8   :  { %46 = vmatpush.msra.mxu0 %v19_v3 }
   0x9   :  { %2067 = vmatmul.msk.f32.vlgmr.msra.gmra.mxu0 %vm24_vm0, %v2288_v4 }
  0x11   :  { %2068 = vmatmul.msk.f32.gmra.mxu0 %vm24_vm0, %v2326_v31 }
  0x86   :  { %v48_v7 = vpop.f32.mrf.mxu0 }
  0x87   :  { %v49_v8 = vadd.f32 %v48_v7, %v23_v6 }
  0x89   :  { %96 = vrot.lane.b32.xlu2 %v49_v8, %s2243_s21  ;;  %133 = vrot.lane.b32.xlu1 %v49_v8, %s2244_s22  ;;  %v56_v9 = vmul.f32 1.442695, %v49_v8  ;;  %v55_v10 = vadd.f32 1.0, %v49_v8  ;;  %vm54_vm1 = vcmp.gt.f32.partialorder %v49_v8, 0.0 }
  0x8b   :  { %2156 = vpow2.f32 %v56_v9 }
  0x8e   :  { %v51_v35 = vpop.f32.mrf.mxu0 }
  0x8f   :  { %v2337_v36 = vadd.f32 %v51_v35, %v23_v6 }
  0x91   :  { %v2157_v11 = vpop.eup %2156  ;;  %280 = vrot.lane.b32.xlu2 %v49_v8, %s2245_s23  ;;  %314 = vrot.lane.b32.xlu1 %v49_v8, %s2246_s24  ;;  %v449_v7 = vmul.f32 1.442695, %v2337_v36  ;;  %vm447_vm3 = vcmp.gt.f32.partialorder %v2337_v36, 0.0 }
  0x92   :  { %v2304_v12 = vsel %vm54_vm1, %v55_v10, %v2157_v11 }
  0x93   :  { %60 = vrot.lane.b32.xlu0 %v2304_v12, %s2244_s22 }
  0x99   :  { %245 = vrot.lane.b32.xlu1 %v2304_v12, %s2247_s25 }
  0x9b   :  { %131 = vrot.lane.b32.xlu0 %v49_v8, %s2248_s26 }
  0xa3   :  { %318 = vrot.lane.b32.xlu0 %v49_v8, %s2247_s25 }
  0xe3   :  { %v97_v13 = vpop.permute.xlu2 %96 }
  0xe4   :  { %118 = vmatpush.msra.mxu1 %v97_v13  ;;  %237 = vmatpush.msra.mxu3 %v97_v13 }
  0xeb   :  { %v281_v14 = vpop.permute.xlu2 %280 }
  0xec   :  { %301 = vmatpush.msrb.mxu1 %v281_v14  ;;  %422 = vmatpush.msrb.mxu3 %v281_v14 }
  0xfb   :  { %v134_v15 = vpop.permute.xlu1 %133 }
  0xfc   :  { %2070 = vmatpush.xpose.msk.msra.mxu2 %vm99_vm2, %v134_v15 }
  0xff   :  { %2071 = vmatmul.msk.f32.vlgmr.msra.gmra.mxu2 %vm99_vm2, %v49_v8  ;;  %v448_v8 = vadd.f32 1.0, %v2337_v36 }
 0x103   :  { %v315_v16 = vpop.permute.xlu1 %314 }
 0x105   :  { %v61_v17 = vpop.permute.xlu0 %60 }
 0x106   :  { %63 = vxpose.xlu2.b32.start.end [1/1] (short) (narrow) %v61_v17, 8 }
 0x10b   :  { %v246_v18 = vpop.permute.xlu1 %245 }
 0x10c   :  { %248 = vxpose.xlu1.b32.start.end [1/1] (short) (narrow) %v246_v18, 8 }
 0x10d   :  { %v132_v19 = vpop.permute.xlu0 %131 }
 0x10e   :  { %2072 = vmatmul.msk.f32.gmra.mxu2 %vm99_vm2, %v132_v19  ;;  %316 = vrot.lane.b32.xlu0 %v132_v19, %s2246_s24 }
 0x115   :  { %v319_v30 = vpop.permute.xlu0 %318 }
 0x180   :  { %v317_v33 = vpop.permute.xlu0 %316 }
 0x182   :  { %v158_v20 = vpop.f32.mrf.mxu2 }
 0x183   :  { %v164_v22 = vmul.f32 0.35355338, %v158_v20 }
 0x185   :  { %v166_v23 = vadd.f32 %v164_v22, %v15_v21 }
 0x187   :  { %v168_v24 = vsel %vm99_vm2, %v166_v23, -inf }
 0x188   :  { %169 = vmax.xlane.f32.xlu0 %v168_v24 }
 0x191   :  { %v161_v25 = vpop.f32.mrf.mxu2 }
 0x192   :  { %v165_v26 = vmul.f32 0.35355338, %v161_v25 }
 0x194   :  { %v167_v27 = vadd.f32 %v165_v26, %v15_v21 }
 0x196   :  { %v171_v28 = vsel %vm99_vm2, %v167_v27, -inf }
 0x197   :  { %172 = vmax.xlane.f32.xlu2 %v171_v28 }
 0x19f   :  { %v79_v29 = vpop.trf.xlu2 }
 0x1a0   :  { %2069 = vmatmul.msk.f32.vlgmr.msra.gmra.mxu1 %vm99_vm2, %v79_v29 }
 0x1a1   :  { %2076 = vmatpush.xpose.msk.msra.mxu1 %vm99_vm2, %v319_v30 }
 0x1af   :  { %671 = vrot.lane.b32.xlu2 %v2337_v36, %s2245_s23 }
 0x1b0   :  { %v264_v32 = vpop.trf.xlu1 }
 0x1b1   :  { %2075 = vmatmul.msk.f32.vlgmr.msrb.gmra.mxu1 %vm99_vm2, %v264_v32 }
 0x1b9   :  { %2077 = vmatmul.msk.f32.vlgmr.msra.gmra.mxu1 %vm99_vm2, %v315_v16 }
 0x1c1   :  { %2078 = vmatmul.msk.f32.gmra.mxu1 %vm99_vm2, %v317_v33 }
 0x1fb   :  { %v170_v46 = vpop.xlane.xlu0 %169 }
 0x1fc   :  { %v174_v47 = vsub.f32 %v166_v23, %v170_v46 }
 0x1fe   :  { %v176_v48 = vmul.f32 1.442695, %v174_v47 }
 0x200   :  { %2158 = vpow2.f32 %v176_v48 }
 0x206   :  { %v2159_v52 = vpop.eup %2158 }
 0x207   :  { %v180_v53 = vsel %vm99_vm2, %v2159_v52, 0.0 }
 0x20a   :  { %v173_v49 = vpop.xlane.xlu2 %172 }
 0x20b   :  { %v175_v50 = vsub.f32 %v167_v27, %v173_v49 }
 0x20d   :  { %v178_v51 = vmul.f32 1.442695, %v175_v50 }
 0x20f   :  { %2160 = vpow2.f32 %v178_v51 }
 0x212   :  { %v672_v56 = vpop.permute.xlu2 %671 }
 0x213   :  { %692 = vmatpush.msrb.mxu1 %v672_v56 }
 0x215   :  { %v2352_v54 = vpop.eup %2160 }
 0x216   :  { %v183_v55 = vsel %vm99_vm2, %v2352_v54, 0.0 }
 0x21d   :  { %v2333_v34 = vpop.f32.mrf.mxu1 }
 0x22e   :  { %v2341_v37 = vpop.f32.mrf.mxu1 }
 0x236   :  { %v343_v38 = vpop.f32.mrf.mxu1 }
 0x237   :  { %v349_v39 = vmul.f32 0.35355338, %v343_v38 }
 0x239   :  { %v351_v40 = vadd.f32 %v349_v39, %v15_v21 }
 0x23b   :  { %v353_v41 = vsel %vm99_vm2, %v351_v40, -inf }
 0x23c   :  { %354 = vmax.xlane.f32.xlu0 %v353_v41 }
 0x23e   :  { %v346_v42 = vpop.f32.mrf.mxu1 }
 0x23f   :  { %v350_v43 = vmul.f32 0.35355338, %v346_v42 }
 0x241   :  { %v352_v44 = vadd.f32 %v350_v43, %v15_v21 }
 0x243   :  { %v356_v45 = vsel %vm99_vm2, %v352_v44, -inf }
 0x244   :  { %357 = vmax.xlane.f32.xlu1 %v356_v45 }
 0x250   :  { %522 = vrot.lane.b32.xlu0 %v2337_v36, %s2248_s26 }
 0x258   :  { %524 = vrot.lane.b32.xlu0 %v2337_v36, %s2244_s22 }
 0x260   :  { %708 = vrot.lane.b32.xlu0 %v2337_v36, %s2247_s25 }
 0x28a   :  { %181 = vadd.xlane.f32.xlu0 %v180_v53 }
 0x292   :  { %184 = vadd.xlane.f32.xlu0 %v183_v55 }
 0x2af   :  { %v355_v57 = vpop.xlane.xlu0 %354 }
 0x2b0   :  { %v359_v58 = vsub.f32 %v351_v40, %v355_v57 }
 0x2b2   :  { %v361_v59 = vmul.f32 1.442695, %v359_v58 }
 0x2b4   :  { %2162 = vpow2.f32 %v361_v59 }
 0x2b7   :  { %v358_v60 = vpop.xlane.xlu1 %357 }
 0x2b8   :  { %v360_v61 = vsub.f32 %v352_v44, %v358_v60 }
 0x2ba   :  { %v2356_v62 = vpop.eup %2162  ;;  %v363_v63 = vmul.f32 1.442695, %v360_v61 }
 0x2bb   :  { %v365_v0 = vsel %vm99_vm2, %v2356_v62, 0.0 }
 0x2bc   :  { %2164 = vpow2.f32 %v363_v63  ;;  %366 = vadd.xlane.f32.xlu0 %v365_v0 }
 0x2bd   :  { %2166 = vpow2.f32 %v449_v7  ;;  %v16_v7 = vld [vmem:[%s2814_s0 + $0x28] sm:$0xff] }
 0x2c2   :  { %v2360_v1 = vpop.eup %2164  ;;  %v2362_v2 = vpop.permute.xlu0 %522 }
 0x2c3   :  { %v368_v3 = vsel %vm99_vm2, %v2360_v1, 0.0  ;;  %v2167_v9 = vpop.eup %2166 }
 0x2c4   :  { %369 = vadd.xlane.f32.xlu0 %v368_v3  ;;  %v2376_v10 = vsel %vm447_vm3, %v448_v8, %v2167_v9 }
 0x2ca   :  { %v525_v6 = vpop.permute.xlu0 %524 }
 0x2cb   :  { %2082 = vmatpush.xpose.msk.msrb.mxu0 %vm99_vm2, %v525_v6 }
 0x2ce   :  { %2083 = vmatmul.msk.f32.vlgmr.msrb.gmra.mxu0 %vm99_vm2, %v2337_v36 }
 0x2cf   :  { %812 = vmatpush.msra.mxu0 %v672_v56 }
 0x2d2   :  { %v2380_v11 = vpop.permute.xlu0 %708 }
 0x2d8   :  { %704 = vrot.lane.b32.xlu0 %v2337_v36, %s2246_s24 }
 0x2e0   :  { %706 = vrot.lane.b32.xlu0 %v2362_v2, %s2246_s24 }
 0x2e8   :  { %636 = vrot.lane.b32.xlu0 %v2376_v10, %s2247_s25 }
 0x2fd   :  { %v182_v13 = vpop.xlane.xlu0 %181 }
 0x2fe   :  { %2168 = vrcp.f32 %v182_v13  ;;  %v197_v18 = vand.u32 2147483648, %v182_v13  ;;  %v195_v20 = vand.u32 2147483647, %v182_v13  ;;  %vm191_vm5 = vweird.f32 %v182_v13 }
 0x300   :  { %v198_v23 = vor.u32 1.1754944e-38, %v197_v18  ;;  %vm196_vm7 = vcmp.eq.f32.partialorder %v195_v20, 8.507059e+37 }
 0x304   :  { %v2169_v14 = vpop.eup %2168 }
 0x305   :  { %v187_v15 = vmul.f32 %v2169_v14, %v182_v13  ;;  %v185_v16 = vpop.xlane.xlu0 %184  ;;  %vm192_vm4 = vweird.f32 %v2169_v14 }
 0x306   :  { %2170 = vrcp.f32 %v185_v16  ;;  %vm193_vm6 = vmor %vm191_vm5, %vm192_vm4  ;;  %v212_v29 = vand.u32 2147483648, %v185_v16  ;;  %v210_v32 = vand.u32 2147483647, %v185_v16  ;;  %vm206_vm9 = vweird.f32 %v185_v16 }
 0x307   :  { %v188_v17 = vsub.f32 1.0, %v187_v15 }
 0x308   :  { %v213_v35 = vor.u32 1.1754944e-38, %v212_v29  ;;  %vm211_vm11 = vcmp.eq.f32.partialorder %v210_v32, 8.507059e+37 }
 0x309   :  { %v189_v19 = vmul.f32 %v2169_v14, %v188_v17 }
 0x30b   :  { %v190_v21 = vadd.f32 %v2169_v14, %v189_v19 }
 0x30c   :  { %v2171_v22 = vpop.eup %2170 }
 0x30d   :  { %v202_v24 = vmul.f32 %v2171_v22, %v185_v16  ;;  %v194_v25 = vsel %vm193_vm6, %v2169_v14, %v190_v21  ;;  %vm207_vm8 = vweird.f32 %v2171_v22  ;;  %vm443_vm6 = vcmask 130048  }
 0x30e   :  { %v199_v26 = vsel %vm196_vm7, %v198_v23, %v194_v25  ;;  %vm208_vm10 = vmor %vm206_vm9, %vm207_vm8  ;;  %vm445_vm7 = vcmask 195584  }
 0x30f   :  { %v203_v27 = vsub.f32 1.0, %v202_v24  ;;  %v200_v28 = vmul.f32 %v2159_v52, %v199_v26 }
 0x311   :  { %v204_v30 = vmul.f32 %v2171_v22, %v203_v27  ;;  %2073 = vmatmul.msk.f32.vlgmr.msra.gmra.mxu3 %vm99_vm2, %v200_v28 }
 0x312   :  { %2129 = vmatpush.xpose.msk.msra.mxu3 %vm99_vm2, %v525_v6 }
 0x313   :  { %v205_v33 = vadd.f32 %v2171_v22, %v204_v30 }
 0x315   :  { %v209_v38 = vsel %vm208_vm10, %v2171_v22, %v205_v33 }
 0x316   :  { %v214_v39 = vsel %vm211_vm11, %v213_v35, %v209_v38 }
 0x317   :  { %v215_v40 = vmul.f32 %v2352_v54, %v214_v39  ;;  %v838_v39 = vld [vmem:[%s2813_s1 + $0x38] sm:$0xff] }
 0x318   :  { %857 = vmatpush.msra.mxu1 %v838_v39 }
 0x319   :  { %2074 = vmatmul.msk.f32.gmra.mxu3 %vm99_vm2, %v215_v40  ;;  %v837_v40 = vld [vmem:[%s2813_s1 + $0x30] sm:$0xff] }
 0x31a   :  { %858 = vmatpush.msra.mxu1 %v837_v40 }
 0x32f   :  { %v367_v41 = vpop.xlane.xlu0 %366 }
 0x330   :  { %2172 = vrcp.f32 %v367_v41  ;;  %v382_v46 = vand.u32 2147483648, %v367_v41  ;;  %v380_v48 = vand.u32 2147483647, %v367_v41  ;;  %vm376_vm13 = vweird.f32 %v367_v41 }
 0x332   :  { %v383_v51 = vor.u32 1.1754944e-38, %v382_v46  ;;  %vm381_vm15 = vcmp.eq.f32.partialorder %v380_v48, 8.507059e+37 }
 0x336   :  { %v2173_v42 = vpop.eup %2172 }
 0x337   :  { %v372_v43 = vmul.f32 %v2173_v42, %v367_v41  ;;  %v370_v44 = vpop.xlane.xlu0 %369  ;;  %vm377_vm12 = vweird.f32 %v2173_v42  ;;  %v836_v41 = vld [vmem:[%s2813_s1 + $0x28] sm:$0xff] }
 0x338   :  { %2174 = vrcp.f32 %v370_v44  ;;  %vm378_vm14 = vmor %vm376_vm13, %vm377_vm12  ;;  %v397_v57 = vand.u32 2147483648, %v370_v44  ;;  %v395_v59 = vand.u32 2147483647, %v370_v44  ;;  %vm391_vm3 = vweird.f32 %v370_v44  ;;  %859 = vmatpush.msra.mxu1 %v836_v41 }
 0x339   :  { %v373_v45 = vsub.f32 1.0, %v372_v43 }
 0x33a   :  { %v398_v61 = vor.u32 1.1754944e-38, %v397_v57  ;;  %vm396_vm5 = vcmp.eq.f32.partialorder %v395_v59, 8.507059e+37 }
 0x33b   :  { %v374_v47 = vmul.f32 %v2173_v42, %v373_v45 }
 0x33d   :  { %v375_v49 = vadd.f32 %v2173_v42, %v374_v47 }
 0x33e   :  { %v2175_v50 = vpop.eup %2174 }
 0x33f   :  { %v387_v52 = vmul.f32 %v2175_v50, %v370_v44  ;;  %v379_v53 = vsel %vm378_vm14, %v2173_v42, %v375_v49  ;;  %vm392_vm1 = vweird.f32 %v2175_v50 }
 0x340   :  { %v384_v54 = vsel %vm381_vm15, %v383_v51, %v379_v53  ;;  %vm393_vm4 = vmor %vm391_vm3, %vm392_vm1 }
 0x341   :  { %v388_v55 = vsub.f32 1.0, %v387_v52  ;;  %v385_v56 = vmul.f32 %v2356_v62, %v384_v54 }
 0x343   :  { %v389_v58 = vmul.f32 %v2175_v50, %v388_v55  ;;  %2079 = vmatmul.msk.f32.vlgmr.msrb.gmra.mxu3 %vm99_vm2, %v385_v56 }
 0x344   :  { %2088 = vmatpush.xpose.msk.msrb.mxu3 %vm99_vm2, %v2380_v11 }
 0x345   :  { %v390_v60 = vadd.f32 %v2175_v50, %v389_v58 }
 0x347   :  { %v394_v63 = vsel %vm393_vm4, %v2175_v50, %v390_v60 }
 0x348   :  { %v399_v0 = vsel %vm396_vm5, %v398_v61, %v394_v63 }
 0x349   :  { %v400_v3 = vmul.f32 %v2360_v1, %v399_v0 }
 0x34a   :  { %v705_v6 = vpop.permute.xlu0 %704 }
 0x34b   :  { %2080 = vmatmul.msk.f32.gmra.mxu3 %vm99_vm2, %v400_v3  ;;  %v549_v62 = vpop.f32.mrf.mxu0 }
 0x34c   :  { %v555_v8 = vmul.f32 0.35355338, %v549_v62 }
 0x34e   :  { %v557_v9 = vadd.f32 %v555_v8, %v16_v7 }
 0x350   :  { %v559_v11 = vsel %vm99_vm2, %v557_v9, -inf }
 0x351   :  { %560 = vmax.xlane.f32.xlu0 %v559_v11 }
 0x352   :  { %v707_v13 = vpop.permute.xlu0 %706 }
 0x353   :  { %2084 = vmatmul.msk.f32.vlgmr.msra.gmra.mxu3 %vm99_vm2, %v2362_v2 }
 0x35a   :  { %v637_v14 = vpop.permute.xlu0 %636 }
 0x35b   :  { %2089 = vmatmul.msk.f32.vlgmr.msrb.gmra.mxu3 %vm99_vm2, %v705_v6  ;;  %639 = vxpose.xlu2.b32.start.end [1/1] (short) (narrow) %v637_v14, 8 }
 0x363   :  { %2090 = vmatmul.msk.f32.gmra.mxu3 %vm99_vm2, %v707_v13 }
 0x394   :  { %v239_v1 = vpop.f32.mrf.mxu3 }
 0x39c   :  { %v242_v15 = vpop.f32.mrf.mxu3 }
 0x39d   :  { %431 = vrot.lane.b32.xlu1 %v242_v15, %s2249_s5 }
 0x3c4   :  { %v561_v18 = vpop.xlane.xlu0 %560 }
 0x3c5   :  { %v565_v2 = vsub.f32 %v557_v9, %v561_v18 }
 0x3c6   :  { %v424_v16 = vpop.f32.mrf.mxu3 }
 0x3c7   :  { %435 = vrot.lane.b32.xlu0 %v424_v16, %s2250_s6  ;;  %v567_v19 = vmul.f32 1.442695, %v565_v2 }
 0x3c9   :  { %2176 = vpow2.f32 %v567_v19 }
 0x3ce   :  { %v427_v17 = vpop.f32.mrf.mxu3 }
 0x3cf   :  { %439 = vrot.lane.b32.xlu0 %v427_v17, %s2251_s7  ;;  %v2406_v26 = vpop.eup %2176 }
 0x3d0   :  { %v571_v29 = vsel %vm99_vm2, %v2406_v26, 0.0 }
 0x3d6   :  { %v552_v20 = vpop.f32.mrf.mxu3 }
 0x3d7   :  { %v556_v21 = vmul.f32 0.35355338, %v552_v20  ;;  %453 = vrot.lane.b32.xlu0 %v2376_v10, %s2244_s22 }
 0x3d9   :  { %v558_v22 = vadd.f32 %v556_v21, %v16_v7 }
 0x3db   :  { %v562_v23 = vsel %vm99_vm2, %v558_v22, -inf }
 0x3dc   :  { %563 = vmax.xlane.f32.xlu1 %v562_v23 }
 0x3de   :  { %v733_v24 = vpop.f32.mrf.mxu3 }
 0x3df   :  { %v739_v25 = vmul.f32 0.35355338, %v733_v24 }
 0x3e1   :  { %v741_v27 = vadd.f32 %v739_v25, %v16_v7 }
 0x3e3   :  { %v743_v28 = vsel %vm99_vm2, %v741_v27, -inf }
 0x3e4   :  { %744 = vmax.xlane.f32.xlu2 %v743_v28  ;;  %572 = vadd.xlane.f32.xlu1 %v571_v29 }
 0x3e6   :  { %v736_v30 = vpop.f32.mrf.mxu3 }
 0x3e7   :  { %v740_v32 = vmul.f32 0.35355338, %v736_v30 }
 0x3e9   :  { %v742_v33 = vadd.f32 %v740_v32, %v16_v7 }
 0x3eb   :  { %v746_v35 = vsel %vm99_vm2, %v742_v33, -inf }
 0x3f4   :  { %v655_v38 = vpop.trf.xlu2 }
 0x3f5   :  { %2087 = vmatmul.msk.f32.vlgmr.msrb.gmra.mxu1 %vm99_vm2, %v655_v38 }
 0x401   :  { %747 = vmax.xlane.f32.xlu0 %v746_v35 }
 0x40f   :  { %v432_v43 = vpop.permute.xlu1 %431 }
 0x410   :  { %v442_v44 = vsel %vm99_vm2, %v239_v1, %v432_v43 }
 0x415   :  { %489 = vrot.lane.b32.xlu0 %v2337_v36, %s2243_s21  ;;  %v835_v36 = vld [vmem:[%s2813_s1 + $0x20] sm:$0xff] }
 0x416   :  { %860 = vmatpush.msra.mxu1 %v835_v36 }
 0x439   :  { %v436_v42 = vpop.permute.xlu0 %435 }
 0x43a   :  { %v444_v45 = vsel %vm443_vm6, %v442_v44, %v436_v42 }
 0x441   :  { %v440_v46 = vpop.permute.xlu0 %439 }
 0x442   :  { %v446_v47 = vsel %vm445_vm7, %v444_v45, %v440_v46 }
 0x443   :  { %2093 = vmatmul.msk.f32.vlgmr.msra.gmra.mxu1 %vm24_vm0, %v446_v47 }
 0x449   :  { %v454_v48 = vpop.permute.xlu0 %453 }
 0x44a   :  { %456 = vxpose.xlu0.b32.start.end [1/1] (short) (narrow) %v454_v48, 8 }
 0x44f   :  { %v564_v49 = vpop.xlane.xlu1 %563 }
 0x450   :  { %v566_v50 = vsub.f32 %v558_v22, %v564_v49 }
 0x452   :  { %v569_v51 = vmul.f32 1.442695, %v566_v50 }
 0x454   :  { %2178 = vpow2.f32 %v569_v51 }
 0x457   :  { %v745_v52 = vpop.xlane.xlu2 %744  ;;  %v573_v9 = vpop.xlane.xlu1 %572 }
 0x458   :  { %v749_v53 = vsub.f32 %v741_v27, %v745_v52  ;;  %v588_v32 = vand.u32 2147483648, %v573_v9  ;;  %vm582_vm13 = vweird.f32 %v573_v9 }
 0x45a   :  { %v2431_v54 = vpop.eup %2178  ;;  %v751_v55 = vmul.f32 1.442695, %v749_v53  ;;  %v589_v40 = vor.u32 1.1754944e-38, %v588_v32 }
 0x45b   :  { %v574_v56 = vsel %vm99_vm2, %v2431_v54, 0.0 }
 0x45c   :  { %2180 = vpow2.f32 %v751_v55  ;;  %575 = vadd.xlane.f32.xlu1 %v574_v56 }
 0x462   :  { %v2181_v57 = vpop.eup %2180 }
 0x463   :  { %v755_v58 = vsel %vm99_vm2, %v2181_v57, 0.0 }
 0x464   :  { %756 = vadd.xlane.f32.xlu1 %v755_v58 }
 0x472   :  { %v2440_v6 = vpop.f32.mrf.mxu1 }
 0x474   :  { %v748_v59 = vpop.xlane.xlu0 %747 }
 0x475   :  { %v750_v60 = vsub.f32 %v742_v33, %v748_v59  ;;  %v586_v33 = vand.u32 2147483647, %v573_v9 }
 0x477   :  { %v753_v61 = vmul.f32 1.442695, %v750_v60  ;;  %vm587_vm15 = vcmp.eq.f32.partialorder %v586_v33, 8.507059e+37 }
 0x479   :  { %2182 = vpow2.f32 %v753_v61  ;;  %v2252_v61 = vmov 32.0  }
 0x47a   :  { %2184 = vrcp.f32 %v573_v9 }
 0x47f   :  { %v2436_v63 = vpop.eup %2182 }
 0x480   :  { %v758_v0 = vsel %vm99_vm2, %v2436_v63, 0.0  ;;  %v2185_v14 = vpop.eup %2184 }
 0x481   :  { %759 = vadd.xlane.f32.xlu1 %v758_v0  ;;  %v578_v15 = vmul.f32 %v2185_v14, %v573_v9  ;;  %vm583_vm12 = vweird.f32 %v2185_v14 }
 0x482   :  { %vm584_vm14 = vmor %vm582_vm13, %vm583_vm12 }
 0x483   :  { %v579_v2 = vsub.f32 1.0, %v578_v15  ;;  %v928_v15 = vld [vmem:[%s2813_s1 + $0x58] sm:$0xff] }
 0x485   :  { %v580_v23 = vmul.f32 %v2185_v14, %v579_v2  ;;  %v925_v2 = vld [vmem:[%s2813_s1 + $0x40] sm:$0xff] }
 0x487   :  { %v490_v3 = vpop.permute.xlu0 %489  ;;  %v581_v29 = vadd.f32 %v2185_v14, %v580_v23 }
 0x488   :  { %510 = vmatpush.msrb.mxu2 %v490_v3 }
 0x489   :  { %v585_v38 = vsel %vm584_vm14, %v2185_v14, %v581_v29 }
 0x48a   :  { %628 = vmatpush.msra.mxu2 %v490_v3  ;;  %v590_v41 = vsel %vm587_vm15, %v589_v40, %v585_v38  ;;  %v922_v40 = vperm.slane %v2295_v5, 5 }
 0x48b   :  { %v591_v44 = vmul.f32 %v2406_v26, %v590_v41 }
 0x4c0   :  { %v862_v62 = vpop.f32.mrf.mxu1 }
 0x4c1   :  { %v2443_v7 = vadd.f32 %v862_v62, %v2288_v4 }
 0x4c3   :  { %v868_v8 = vsel %vm24_vm0, %v2443_v7, 0.0 }
 0x4c4   :  { %869 = vadd.xlane.f32.xlu1 %v868_v8 }
 0x4cf   :  { %v576_v11 = vpop.xlane.xlu1 %575 }
 0x4d0   :  { %v603_v42 = vand.u32 2147483648, %v576_v11  ;;  %vm597_vm3 = vweird.f32 %v576_v11  ;;  %v601_v45 = vand.u32 2147483647, %v576_v11 }
 0x4d2   :  { %v604_v47 = vor.u32 1.1754944e-38, %v603_v42  ;;  %vm602_vm5 = vcmp.eq.f32.partialorder %v601_v45, 8.507059e+37 }
 0x4d7   :  { %v757_v13 = vpop.xlane.xlu1 %756 }
 0x4d8   :  { %2186 = vrcp.f32 %v757_v13  ;;  %v772_v18 = vand.u32 2147483648, %v757_v13  ;;  %v770_v4 = vand.u32 2147483647, %v757_v13  ;;  %vm766_vm9 = vweird.f32 %v757_v13 }
 0x4d9   :  { %2188 = vrcp.f32 %v576_v11 }
 0x4da   :  { %v773_v22 = vor.u32 1.1754944e-38, %v772_v18  ;;  %vm771_vm11 = vcmp.eq.f32.partialorder %v770_v4, 8.507059e+37 }
 0x4de   :  { %v2187_v1 = vpop.eup %2186 }
 0x4df   :  { %v762_v16 = vmul.f32 %v2187_v1, %v757_v13  ;;  %vm767_vm8 = vweird.f32 %v2187_v1  ;;  %v2189_v20 = vpop.eup %2188 }
 0x4e0   :  { %vm768_vm10 = vmor %vm766_vm9, %vm767_vm8  ;;  %v593_v24 = vmul.f32 %v2189_v20, %v576_v11  ;;  %vm598_vm1 = vweird.f32 %v2189_v20 }
 0x4e1   :  { %v763_v17 = vsub.f32 1.0, %v762_v16  ;;  %vm599_vm4 = vmor %vm597_vm3, %vm598_vm1  ;;  %v927_v16 = vld [vmem:[%s2813_s1 + $0x50] sm:$0xff] }
 0x4e2   :  { %v594_v30 = vsub.f32 1.0, %v593_v24 }
 0x4e3   :  { %v764_v19 = vmul.f32 %v2187_v1, %v763_v17 }
 0x4e4   :  { %v595_v39 = vmul.f32 %v2189_v20, %v594_v30 }
 0x4e5   :  { %v765_v21 = vadd.f32 %v2187_v1, %v764_v19 }
 0x4e6   :  { %v596_v36 = vadd.f32 %v2189_v20, %v595_v39 }
 0x4e7   :  { %v769_v25 = vsel %vm768_vm10, %v2187_v1, %v765_v21 }
 0x4e8   :  { %v774_v27 = vsel %vm771_vm11, %v773_v22, %v769_v25  ;;  %v600_v46 = vsel %vm599_vm4, %v2189_v20, %v596_v36  ;;  %v2146_v20 = vpack.i.bf16 %v927_v16, %v928_v15 }
 0x4e9   :  { %v775_v28 = vmul.f32 %v2181_v57, %v774_v27  ;;  %v605_v48 = vsel %vm602_vm5, %v604_v47, %v600_v46 }
 0x4ea   :  { %v606_v51 = vmul.f32 %v2431_v54, %v605_v48 }
 0x4eb   :  { %2091 = vmatmul.msk.f32.vlgmr.msra.gmra.mxu0 %vm99_vm2, %v775_v28 }
 0x4ee   :  { %v472_v35 = vpop.trf.xlu0 }
 0x4ef   :  { %2081 = vmatmul.msk.f32.vlgmr.msrb.gmra.mxu2 %vm99_vm2, %v472_v35  ;;  %v919_v35 = vperm.slane %v2295_v5, 4 }
 0x4f0   :  { %948 = vmatpush.msrb.mxu2 %v928_v15 }
 0x4f2   :  { %949 = vmatpush.msrb.mxu2 %v927_v16 }
 0x4f4   :  { %v760_v43 = vpop.xlane.xlu1 %759 }
 0x4f5   :  { %2190 = vrcp.f32 %v760_v43  ;;  %v787_v53 = vand.u32 2147483648, %v760_v43  ;;  %v785_v56 = vand.u32 2147483647, %v760_v43  ;;  %vm781_vm9 = vweird.f32 %v760_v43 }
 0x4f6   :  { %2192 = vrcp.f32 %v2252_v61 }
 0x4f7   :  { %2085 = vmatmul.msk.f32.vlgmr.msra.gmra.mxu2 %vm99_vm2, %v591_v44  ;;  %v788_v57 = vor.u32 1.1754944e-38, %v787_v53  ;;  %vm786_vm11 = vcmp.eq.f32.partialorder %v785_v56, 8.507059e+37  ;;  %v13_v56 = vld [vmem:[%s2814_s0 + $0x10] sm:$0xff] }
 0x4fb   :  { %v2191_v49 = vpop.eup %2190 }
 0x4fc   :  { %v777_v50 = vmul.f32 %v2191_v49, %v760_v43  ;;  %vm782_vm8 = vweird.f32 %v2191_v49  ;;  %v2193_v54 = vpop.eup %2192  ;;  %v2491_v43 = vperm.slane %v2295_v5, 1 }
 0x4fd   :  { %vm783_vm10 = vmor %vm781_vm9, %vm782_vm8  ;;  %v875_v0 = vmul.f32 32.0, %v2193_v54  ;;  %vm879_vm12 = vweird.f32 %v2193_v54 }
 0x4fe   :  { %v778_v52 = vsub.f32 1.0, %v777_v50 }
 0x4ff   :  { %2086 = vmatmul.msk.f32.gmra.mxu2 %vm99_vm2, %v606_v51  ;;  %v876_v3 = vsub.f32 1.0, %v875_v0 }
 0x500   :  { %v779_v55 = vmul.f32 %v2191_v49, %v778_v52 }
 0x501   :  { %v877_v62 = vmul.f32 %v2193_v54, %v876_v3 }
 0x502   :  { %v780_v26 = vadd.f32 %v2191_v49, %v779_v55 }
 0x503   :  { %v878_v8 = vadd.f32 %v2193_v54, %v877_v62 }
 0x504   :  { %v784_v58 = vsel %vm783_vm10, %v2191_v49, %v780_v26  ;;  %v14_v26 = vld [vmem:[%s2814_s0 + $0x18] sm:$0xff]  ;;  %s2253_s0 = smov 104  }
 0x505   :  { %v789_v59 = vsel %vm786_vm11, %v788_v57, %v784_v58  ;;  %v2455_v9 = vsel %vm879_vm12, %v2193_v54, %v878_v8 }
 0x506   :  { %v790_v60 = vmul.f32 %v2436_v63, %v789_v59 }
 0x508   :  { %2092 = vmatmul.msk.f32.gmra.mxu0 %vm99_vm2, %v790_v60 }
 0x537   :  { %v870_v11 = vpop.xlane.xlu1 %869 }
 0x538   :  { %v881_v13 = vmul.f32 %v2455_v9, %v870_v11 }
 0x53a   :  { %v883_v14 = vsub.f32 %v2443_v7, %v881_v13  ;;  %v926_v7 = vld [vmem:[%s2813_s1 + $0x48] sm:$0xff] }
 0x53b   :  { %950 = vmatpush.msrb.mxu2 %v926_v7  ;;  %v2151_v22 = vpack.i.bf16 %v925_v2, %v926_v7 }
 0x53c   :  { %v885_v1 = vmul.f32 %v883_v14, %v883_v14 }
 0x53d   :  { %951 = vmatpush.msrb.mxu2 %v925_v2 }
 0x53e   :  { %v887_v63 = vsel %vm24_vm0, %v885_v1, 0.0 }
 0x53f   :  { %888 = vadd.xlane.f32.xlu1 %v887_v63 }
 0x568   :  { %v814_v17 = vpop.f32.mrf.mxu0 }
 0x569   :  { %825 = vrot.lane.b32.xlu0 %v814_v17, %s2250_s6 }
 0x572   :  { %v2467_v18 = vpop.f32.mrf.mxu2 }
 0x57a   :  { %v630_v19 = vpop.f32.mrf.mxu2 }
 0x582   :  { %v633_v4 = vpop.f32.mrf.mxu2 }
 0x583   :  { %821 = vrot.lane.b32.xlu1 %v633_v4, %s2249_s5 }
 0x585   :  { %v817_v21 = vpop.f32.mrf.mxu0 }
 0x58b   :  { %2147 = vrot.lane.b32.xlu1 %v2146_v20, %s2244_s22 }
 0x593   :  { %829 = vrot.lane.b32.xlu1 %v817_v21, %s2251_s7 }
 0x59b   :  { %2152 = vrot.lane.b32.xlu1 %v2151_v22, %s2244_s22 }
 0x5a3   :  { %976 = vrot.lane.b32.xlu1 %v2491_v43, %s2244_s22 }
 0x5b2   :  { %v889_v23 = vpop.xlane.xlu1 %888 }
 0x5b3   :  { %v893_v24 = vmul.f32 %v889_v23, %v2455_v9 }
 0x5b5   :  { %v895_v25 = vadd.f32 1e-05, %v893_v24 }
 0x5b7   :  { %2194 = vrsqrt.f32 %v895_v25  ;;  %vm903_vm14 = vweird.f32 %v895_v25 }
 0x5bd   :  { %v2195_v27 = vpop.eup %2194 }
 0x5be   :  { %v898_v28 = vmul.f32 %v2195_v27, %v895_v25  ;;  %vm904_vm13 = vweird.f32 %v2195_v27 }
 0x5bf   :  { %vm905_vm15 = vmor %vm903_vm14, %vm904_vm13 }
 0x5c0   :  { %v899_v29 = vmul.f32 %v2195_v27, %v898_v28 }
 0x5c2   :  { %v900_v30 = vmul.f32 0.5, %v899_v29 }
 0x5c4   :  { %v901_v32 = vsub.f32 1.5, %v900_v30 }
 0x5c6   :  { %v902_v33 = vmul.f32 %v2195_v27, %v901_v32 }
 0x5c8   :  { %v906_v38 = vsel %vm905_vm15, %v2195_v27, %v902_v33 }
 0x5c9   :  { %v917_v39 = vmul.f32 %v906_v38, %v883_v14 }
 0x5cb   :  { %v920_v41 = vmul.f32 %v919_v35, %v917_v39 }
 0x5cd   :  { %v2486_v36 = vadd.f32 %v922_v40, %v920_v41 }
 0x5cf   :  { %2095 = vmatmul.msk.f32.vlgmr.msrb.gmra.mxu2 %vm24_vm0, %v2486_v36 }
 0x5db   :  { %v826_v48 = vpop.permute.xlu0 %825 }
 0x5f5   :  { %v822_v42 = vpop.permute.xlu1 %821 }
 0x5f6   :  { %v832_v47 = vsel %vm99_vm2, %v630_v19, %v822_v42 }
 0x5f7   :  { %v833_v50 = vsel %vm443_vm6, %v832_v47, %v826_v48 }
 0x5fd   :  { %v2148_v44 = vpop.permute.xlu1 %2147 }
 0x5fe   :  { %v2149_v45 = vunpack.i.l.bf16 %v2148_v44  ;;  %v2150_v46 = vunpack.i.h.bf16 %v2148_v44 }
 0x600   :  { %997 = vmatpush.msra.mxu3 %v2149_v45 }
 0x602   :  { %998 = vmatpush.msra.mxu3 %v2150_v46 }
 0x605   :  { %v830_v49 = vpop.permute.xlu1 %829 }
 0x606   :  { %v834_v51 = vsel %vm445_vm7, %v833_v50, %v830_v49 }
 0x607   :  { %2094 = vmatmul.msk.f32.gmra.mxu1 %vm24_vm0, %v834_v51 }
 0x60d   :  { %v2153_v52 = vpop.permute.xlu1 %2152 }
 0x60e   :  { %v2155_v53 = vunpack.i.h.bf16 %v2153_v52  ;;  %v2154_v55 = vunpack.i.l.bf16 %v2153_v52 }
 0x610   :  { %999 = vmatpush.msra.mxu3 %v2154_v55 }
 0x612   :  { %1000 = vmatpush.msra.mxu3 %v2155_v53 }
 0x613   :  { %2097 = vmatmul.msk.f32.vlgmr.msra.gmra.mxu3 %vm24_vm0, %v13_v56 }
 0x615   :  { %v2511_v54 = vpop.permute.xlu1 %976 }
 0x61b   :  { %2098 = vmatmul.msk.f32.gmra.mxu3 %vm24_vm0, %v14_v26 }
 0x652   :  { %v953_v57 = vpop.f32.mrf.mxu2 }
 0x653   :  { %v954_v58 = vadd.f32 %v953_v57, %v2491_v43 }
 0x655   :  { %1080 = vrot.lane.b32.xlu2 %v954_v58, %s2248_s26 }
 0x684   :  { %v865_v59 = vpop.f32.mrf.mxu1 }
 0x685   :  { %v866_v60 = vadd.f32 %v865_v59, %v2326_v31 }
 0x687   :  { %v871_v61 = vsel %vm24_vm0, %v866_v60, 0.0 }
 0x688   :  { %872 = vadd.xlane.f32.xlu1 %v871_v61 }
 0x696   :  { %v1002_v0 = vpop.f32.mrf.mxu3 }
 0x697   :  { %v1003_v3 = vadd.f32 %v1002_v0, %v2511_v54 }
 0x699   :  { %2100 = vmatpush.xpose.msk.msrb.mxu1 %vm99_vm2, %v1003_v3  ;;  %1264 = vrot.lane.b32.xlu2 %v1003_v3, %s2248_s26  ;;  %v1010_v62 = vmul.f32 1.442695, %v1003_v3  ;;  %v1009_v8 = vadd.f32 1.0, %v1003_v3  ;;  %vm1008_vm1 = vcmp.gt.f32.partialorder %v1003_v3, 0.0 }
 0x69b   :  { %2196 = vpow2.f32 %v1010_v62 }
 0x69c   :  { %2101 = vmatmul.msk.f32.vlgmr.msrb.gmra.mxu1 %vm99_vm2, %v954_v58 }
 0x69e   :  { %v1005_v25 = vpop.f32.mrf.mxu3 }
 0x69f   :  { %v2539_v49 = vadd.f32 %v1005_v25, %v2511_v54 }
 0x6a1   :  { %v2197_v11 = vpop.eup %2196  ;;  %1260 = vrot.lane.b32.xlu2 %v954_v58, %s2246_s24 }
 0x6a2   :  { %v2518_v31 = vsel %vm1008_vm1, %v1009_v8, %v2197_v11  ;;  %vm1389_vm1 = vcmp.gt.f32.partialorder %v2539_v49, 0.0 }
 0x6a3   :  { %1013 = vxpose.xlu0.b32.start.end [1/1] (short) (narrow) %v2518_v31, 8 }
 0x6af   :  { %v1081_v13 = vpop.permute.xlu2 %1080 }
 0x6b0   :  { %1262 = vrot.lane.b32.xlu2 %v1081_v13, %s2246_s24  ;;  %2102 = vmatmul.msk.f32.gmra.mxu1 %vm99_vm2, %v1081_v13 }
 0x6f3   :  { %v1265_v14 = vpop.permute.xlu2 %1264 }
 0x6f4   :  { %2106 = vmatpush.xpose.msk.msrb.mxu3 %vm99_vm2, %v1265_v14 }
 0x6fb   :  { %v1261_v1 = vpop.permute.xlu2 %1260  ;;  %v873_v63 = vpop.xlane.xlu1 %872 }
 0x6fc   :  { %v882_v15 = vmul.f32 %v2455_v9, %v873_v63  ;;  %2107 = vmatmul.msk.f32.vlgmr.msrb.gmra.mxu3 %vm99_vm2, %v1261_v1 }
 0x6fe   :  { %v884_v16 = vsub.f32 %v866_v60, %v882_v15 }
 0x700   :  { %v886_v17 = vmul.f32 %v884_v16, %v884_v16 }
 0x702   :  { %v890_v7 = vsel %vm24_vm0, %v886_v17, 0.0 }
 0x703   :  { %891 = vadd.xlane.f32.xlu1 %v890_v7 }
 0x70a   :  { %v1263_v2 = vpop.permute.xlu2 %1262 }
 0x70b   :  { %2108 = vmatmul.msk.f32.gmra.mxu3 %vm99_vm2, %v1263_v2 }
 0x711   :  { %1191 = vrot.lane.b32.xlu0 %v2518_v31, %s2248_s26 }
 0x719   :  { %1226 = vrot.lane.b32.xlu0 %v1003_v3, %s2253_s0  ;;  %v1105_v19 = vpop.f32.mrf.mxu1 }
 0x71a   :  { %v1111_v4 = vmul.f32 0.35355338, %v1105_v19 }
 0x71c   :  { %1046 = vrot.lane.b32.xlu1 %v1003_v3, %s2246_s24  ;;  %v1113_v20 = vsel %vm99_vm2, %v1111_v4, -inf }
 0x71d   :  { %1114 = vmax.xlane.f32.xlu2 %v1113_v20 }
 0x72d   :  { %v1108_v21 = vpop.f32.mrf.mxu1 }
 0x72e   :  { %v1112_v22 = vmul.f32 0.35355338, %v1108_v21 }
 0x730   :  { %v1116_v23 = vsel %vm99_vm2, %v1112_v22, -inf }
 0x746   :  { %1117 = vmax.xlane.f32.xlu1 %v1116_v23 }
 0x747   :  { %v1029_v29 = vpop.trf.xlu0 }
 0x776   :  { %v892_v24 = vpop.xlane.xlu1 %891 }
 0x777   :  { %v894_v27 = vmul.f32 %v892_v24, %v2455_v9 }
 0x779   :  { %v896_v28 = vadd.f32 1e-05, %v894_v27 }
 0x77b   :  { %2198 = vrsqrt.f32 %v896_v28  ;;  %vm913_vm4 = vweird.f32 %v896_v28 }
 0x77f   :  { %v1289_v30 = vpop.f32.mrf.mxu3 }
 0x780   :  { %v1295_v32 = vmul.f32 0.35355338, %v1289_v30 }
 0x781   :  { %v2199_v33 = vpop.eup %2198 }
 0x782   :  { %v908_v38 = vmul.f32 %v2199_v33, %v896_v28  ;;  %v1297_v39 = vsel %vm99_vm2, %v1295_v32, -inf  ;;  %vm914_vm3 = vweird.f32 %v2199_v33 }
 0x783   :  { %1298 = vmax.xlane.f32.xlu1 %v1297_v39  ;;  %v2536_v42 = vpop.permute.xlu0 %1191  ;;  %vm915_vm5 = vmor %vm913_vm4, %vm914_vm3 }
 0x784   :  { %v909_v41 = vmul.f32 %v2199_v33, %v908_v38 }
 0x786   :  { %v910_v44 = vmul.f32 0.5, %v909_v41 }
 0x788   :  { %v911_v45 = vsub.f32 1.5, %v910_v44 }
 0x78a   :  { %v912_v46 = vmul.f32 %v2199_v33, %v911_v45 }
 0x78b   :  { %v1227_v51 = vpop.permute.xlu0 %1226 }
 0x78c   :  { %v916_v47 = vsel %vm915_vm5, %v2199_v33, %v912_v46 }
 0x78d   :  { %v918_v48 = vmul.f32 %v916_v47, %v884_v16 }
 0x78e   :  { %v1047_v50 = vpop.permute.xlu1 %1046  ;;  %v1292_v58 = vpop.f32.mrf.mxu3 }
 0x78f   :  { %1067 = vmatpush.msrb.mxu0 %v1047_v50  ;;  %1182 = vmatpush.msra.mxu2 %v1047_v50  ;;  %v921_v52 = vmul.f32 %v919_v35, %v918_v48  ;;  %v1296_v59 = vmul.f32 0.35355338, %v1292_v58 }
 0x790   :  { %v1115_v53 = vpop.xlane.xlu2 %1114  ;;  %2099 = vmatmul.msk.f32.vlgmr.msrb.gmra.mxu0 %vm99_vm2, %v1029_v29 }
 0x791   :  { %1247 = vmatpush.msra.mxu0 %v1227_v51  ;;  %2112 = vmatpush.xpose.msk.msrb.mxu2 %vm99_vm2, %v2539_v49  ;;  %v1119_v55 = vsub.f32 %v1111_v4, %v1115_v53  ;;  %v2548_v56 = vadd.f32 %v922_v40, %v921_v52  ;;  %v1300_v60 = vsel %vm99_vm2, %v1296_v59, -inf  ;;  %v1390_v53 = vadd.f32 1.0, %v2539_v49 }
 0x793   :  { %1366 = vmatpush.msrb.mxu0 %v1227_v51  ;;  %v1121_v26 = vmul.f32 1.442695, %v1119_v55  ;;  %2096 = vmatmul.msk.f32.gmra.mxu2 %vm24_vm0, %v2548_v56  ;;  %v1391_v51 = vmul.f32 1.442695, %v2539_v49 }
 0x795   :  { %2200 = vpow2.f32 %v1121_v26 }
 0x79b   :  { %v2201_v57 = vpop.eup %2200 }
 0x79c   :  { %v1125_v35 = vsel %vm99_vm2, %v2201_v57, 0.0 }
 0x79d   :  { %1126 = vadd.xlane.f32.xlu1 %v1125_v35 }
 0x7a5   :  { %1301 = vmax.xlane.f32.xlu1 %v1300_v60 }
 0x7b9   :  { %v1118_v5 = vpop.xlane.xlu1 %1117 }
 0x7ba   :  { %v1120_v40 = vsub.f32 %v1112_v22, %v1118_v5 }
 0x7bc   :  { %v1123_v61 = vmul.f32 1.442695, %v1120_v40 }
 0x7be   :  { %1644 = vrot.lane.b32.xlu1 %v2539_v49, %s2248_s26  ;;  %2202 = vpow2.f32 %v1123_v61 }
 0x7c4   :  { %v2203_v54 = vpop.eup %2202 }
 0x7c5   :  { %v1128_v0 = vsel %vm99_vm2, %v2203_v54, 0.0 }
 0x7e8   :  { %1129 = vadd.xlane.f32.xlu1 %v1128_v0 }
 0x7f6   :  { %v1299_v3 = vpop.xlane.xlu1 %1298 }
 0x7f7   :  { %v1303_v62 = vsub.f32 %v1295_v32, %v1299_v3 }
 0x7f9   :  { %v1305_v8 = vmul.f32 1.442695, %v1303_v62 }
 0x7fb   :  { %2204 = vpow2.f32 %v1305_v8 }
 0x801   :  { %v2557_v11 = vpop.eup %2204 }
 0x802   :  { %v1309_v13 = vsel %vm99_vm2, %v2557_v11, 0.0 }
 0x803   :  { %1310 = vadd.xlane.f32.xlu0 %v1309_v13 }
 0x810   :  { %v1127_v14 = vpop.xlane.xlu1 %1126 }
 0x811   :  { %2206 = vrcp.f32 %v1127_v14  ;;  %v1142_v7 = vand.u32 2147483648, %v1127_v14  ;;  %v1140_v19 = vand.u32 2147483647, %v1127_v14  ;;  %vm1136_vm9 = vweird.f32 %v1127_v14 }
 0x813   :  { %v1143_v20 = vor.u32 1.1754944e-38, %v1142_v7  ;;  %vm1141_vm11 = vcmp.eq.f32.partialorder %v1140_v19, 8.507059e+37 }
 0x816   :  { %v956_v1 = vpop.f32.mrf.mxu2 }
 0x817   :  { %v2207_v63 = vpop.eup %2206  ;;  %v957_v15 = vadd.f32 %v956_v1, %v2491_v43 }
 0x818   :  { %v1132_v16 = vmul.f32 %v2207_v63, %v1127_v14  ;;  %vm1137_vm8 = vweird.f32 %v2207_v63  ;;  %v1302_v43 = vpop.xlane.xlu1 %1301 }
 0x819   :  { %1461 = vrot.lane.b32.xlu2 %v957_v15, %s2248_s26  ;;  %1640 = vrot.lane.b32.xlu0 %v957_v15, %s2246_s24  ;;  %vm1138_vm10 = vmor %vm1136_vm9, %vm1137_vm8  ;;  %v1304_v24 = vsub.f32 %v1296_v59, %v1302_v43 }
 0x81a   :  { %v1133_v17 = vsub.f32 1.0, %v1132_v16 }
 0x81b   :  { %v1307_v25 = vmul.f32 1.442695, %v1304_v24 }
 0x81c   :  { %v1134_v2 = vmul.f32 %v2207_v63, %v1133_v17 }
 0x81d   :  { %2208 = vpow2.f32 %v1307_v25 }
 0x81e   :  { %v1135_v4 = vadd.f32 %v2207_v63, %v1134_v2 }
 0x820   :  { %v1139_v21 = vsel %vm1138_vm10, %v2207_v63, %v1135_v4 }
 0x821   :  { %v1144_v22 = vsel %vm1141_vm11, %v1143_v20, %v1139_v21 }
 0x822   :  { %v1145_v23 = vmul.f32 %v2201_v57, %v1144_v22 }
 0x823   :  { %v2565_v27 = vpop.eup %2208 }
 0x824   :  { %2103 = vmatmul.msk.f32.vlgmr.msra.gmra.mxu2 %vm99_vm2, %v1145_v23  ;;  %v1312_v28 = vsel %vm99_vm2, %v2565_v27, 0.0 }
 0x830   :  { %v1645_v29 = vpop.permute.xlu1 %1644 }
 0x842   :  { %1313 = vadd.xlane.f32.xlu2 %v1312_v28 }
 0x85b   :  { %v1130_v30 = vpop.xlane.xlu1 %1129 }
 0x85c   :  { %2210 = vrcp.f32 %v1130_v30  ;;  %v1157_v39 = vand.u32 2147483648, %v1130_v30  ;;  %v1155_v44 = vand.u32 2147483647, %v1130_v30  ;;  %vm1151_vm13 = vweird.f32 %v1130_v30 }
 0x85d   :  { %2212 = vpow2.f32 %v1391_v51 }
 0x85e   :  { %v1158_v46 = vor.u32 1.1754944e-38, %v1157_v39  ;;  %vm1156_vm15 = vcmp.eq.f32.partialorder %v1155_v44, 8.507059e+37 }
 0x862   :  { %v2211_v32 = vpop.eup %2210 }
 0x863   :  { %v1147_v33 = vmul.f32 %v2211_v32, %v1130_v30  ;;  %vm1152_vm12 = vweird.f32 %v2211_v32  ;;  %v2213_v55 = vpop.eup %2212 }
 0x864   :  { %vm1153_vm14 = vmor %vm1151_vm13, %vm1152_vm12 }
 0x865   :  { %v1148_v38 = vsub.f32 1.0, %v1147_v33 }
 0x867   :  { %v1149_v41 = vmul.f32 %v2211_v32, %v1148_v38 }
 0x869   :  { %v1150_v45 = vadd.f32 %v2211_v32, %v1149_v41  ;;  %v2595_v41 = vpop.f32.mrf.mxu0 }
 0x86b   :  { %1194 = vxpose.xlu2.b32.start.end [1/1] (short) (narrow) %v2536_v42, 8  ;;  %v1154_v47 = vsel %vm1153_vm14, %v2211_v32, %v1150_v45  ;;  %v2576_v42 = vsel %vm1389_vm1, %v1390_v53, %v2213_v55 }
 0x86c   :  { %v1159_v48 = vsel %vm1156_vm15, %v1158_v46, %v1154_v47 }
 0x86d   :  { %v1160_v50 = vmul.f32 %v2203_v54, %v1159_v48 }
 0x86f   :  { %2104 = vmatmul.msk.f32.gmra.mxu2 %vm99_vm2, %v1160_v50 }
 0x873   :  { %v1462_v52 = vpop.permute.xlu2 %1461 }
 0x874   :  { %1642 = vrot.lane.b32.xlu1 %v1462_v52, %s2246_s24 }
 0x876   :  { %v1311_v26 = vpop.xlane.xlu0 %1310 }
 0x877   :  { %2113 = vmatmul.msk.f32.vlgmr.msrb.gmra.mxu2 %vm99_vm2, %v957_v15  ;;  %2214 = vrcp.f32 %v1311_v26  ;;  %v1326_v14 = vand.u32 2147483648, %v1311_v26  ;;  %vm1320_vm4 = vweird.f32 %v1311_v26  ;;  %v1324_v63 = vand.u32 2147483647, %v1311_v26 }
 0x879   :  { %v1327_v19 = vor.u32 1.1754944e-38, %v1326_v14  ;;  %vm1325_vm8 = vcmp.eq.f32.partialorder %v1324_v63, 8.507059e+37 }
 0x87c   :  { %1572 = vrot.lane.b32.xlu1 %v2576_v42, %s2248_s26 }
 0x87d   :  { %v2215_v58 = vpop.eup %2214 }
 0x87e   :  { %v1316_v60 = vmul.f32 %v2215_v58, %v1311_v26  ;;  %vm1321_vm3 = vweird.f32 %v2215_v58 }
 0x87f   :  { %2114 = vmatmul.msk.f32.gmra.mxu2 %vm99_vm2, %v1462_v52  ;;  %vm1322_vm5 = vmor %vm1320_vm4, %vm1321_vm3 }
 0x880   :  { %v1317_v5 = vsub.f32 1.0, %v1316_v60 }
 0x882   :  { %v1318_v0 = vmul.f32 %v2215_v58, %v1317_v5 }
 0x884   :  { %v1319_v8 = vadd.f32 %v2215_v58, %v1318_v0 }
 0x886   :  { %v1323_v17 = vsel %vm1322_vm5, %v2215_v58, %v1319_v8 }
 0x887   :  { %v1328_v4 = vsel %vm1325_vm8, %v1327_v19, %v1323_v17 }
 0x888   :  { %v1329_v22 = vmul.f32 %v2557_v11, %v1328_v4 }
 0x8a7   :  { %v2581_v57 = vpop.f32.mrf.mxu2 }
 0x8b5   :  { %v1314_v35 = vpop.xlane.xlu2 %1313 }
 0x8b6   :  { %2216 = vrcp.f32 %v1314_v35  ;;  %v1341_v21 = vand.u32 2147483648, %v1314_v35  ;;  %vm1335_vm10 = vweird.f32 %v1314_v35  ;;  %v1339_v23 = vand.u32 2147483647, %v1314_v35 }
 0x8b8   :  { %v1342_v24 = vor.u32 1.1754944e-38, %v1341_v21  ;;  %vm1340_vm12 = vcmp.eq.f32.partialorder %v1339_v23, 8.507059e+37 }
 0x8bc   :  { %v2217_v40 = vpop.eup %2216 }
 0x8bd   :  { %v1331_v3 = vmul.f32 %v2217_v40, %v1314_v35  ;;  %vm1336_vm9 = vweird.f32 %v2217_v40 }
 0x8be   :  { %vm1337_vm11 = vmor %vm1335_vm10, %vm1336_vm9 }
 0x8bf   :  { %v1332_v13 = vsub.f32 1.0, %v1331_v3 }
 0x8c1   :  { %v1333_v7 = vmul.f32 %v2217_v40, %v1332_v13 }
 0x8c3   :  { %v1334_v20 = vadd.f32 %v2217_v40, %v1333_v7  ;;  %v1770_v7 = vld [vmem:[%s2813_s1 + $0x68] sm:$0xff] }
 0x8c5   :  { %v1338_v43 = vsel %vm1337_vm11, %v2217_v40, %v1334_v20  ;;  %v1769_v20 = vld [vmem:[%s2813_s1 + $0x60] sm:$0xff] }
 0x8c6   :  { %v1343_v25 = vsel %vm1340_vm12, %v1342_v24, %v1338_v43 }
 0x8c7   :  { %v1344_v28 = vmul.f32 %v2565_v27, %v1343_v25 }
 0x8e6   :  { %v1643_v30 = vpop.permute.xlu1 %1642 }
 0x8ee   :  { %v1573_v32 = vpop.permute.xlu1 %1572 }
 0x8f2   :  { %v2583_v59 = vpop.f32.mrf.mxu2 }
 0x8fa   :  { %v1486_v61 = vpop.f32.mrf.mxu2 }
 0x8fb   :  { %v1492_v54 = vmul.f32 0.35355338, %v1486_v61 }
 0x8fd   :  { %v1494_v62 = vsel %vm99_vm2, %v1492_v54, -inf }
 0x8fe   :  { %1495 = vmax.xlane.f32.xlu2 %v1494_v62 }
 0x902   :  { %v1489_v1 = vpop.f32.mrf.mxu2 }
 0x903   :  { %v1493_v15 = vmul.f32 0.35355338, %v1489_v1 }
 0x904   :  { %v1210_v16 = vpop.trf.xlu2 }
 0x905   :  { %2105 = vmatmul.msk.f32.vlgmr.msra.gmra.mxu0 %vm99_vm2, %v1210_v16  ;;  %v1497_v2 = vsel %vm99_vm2, %v1493_v15, -inf }
 0x906   :  { %2118 = vmatpush.xpose.msk.msra.mxu0 %vm99_vm2, %v1645_v29  ;;  %1498 = vmax.xlane.f32.xlu1 %v1497_v2  ;;  %v1641_v29 = vpop.permute.xlu0 %1640 }
 0x90d   :  { %2109 = vmatmul.msk.f32.vlgmr.msrb.gmra.mxu0 %vm99_vm2, %v1329_v22 }
 0x915   :  { %2110 = vmatmul.msk.f32.gmra.mxu0 %vm99_vm2, %v1344_v28 }
 0x91d   :  { %2119 = vmatmul.msk.f32.vlgmr.msra.gmra.mxu0 %vm99_vm2, %v1641_v29 }
 0x925   :  { %2120 = vmatmul.msk.f32.gmra.mxu0 %vm99_vm2, %v1643_v30 }
 0x971   :  { %v1496_v11 = vpop.xlane.xlu2 %1495 }
 0x972   :  { %v1500_v33 = vsub.f32 %v1492_v54, %v1496_v11 }
 0x974   :  { %v1502_v38 = vmul.f32 1.442695, %v1500_v33 }
 0x976   :  { %2218 = vpow2.f32 %v1502_v38 }
 0x979   :  { %v1499_v39 = vpop.xlane.xlu1 %1498 }
 0x97a   :  { %v1501_v44 = vsub.f32 %v1493_v15, %v1499_v39 }
 0x97c   :  { %v2597_v45 = vpop.eup %2218  ;;  %v1504_v27 = vmul.f32 1.442695, %v1501_v44 }
 0x97d   :  { %v1506_v46 = vsel %vm99_vm2, %v2597_v45, 0.0 }
 0x97e   :  { %2220 = vpow2.f32 %v1504_v27  ;;  %1507 = vadd.xlane.f32.xlu0 %v1506_v46 }
 0x982   :  { %v2601_v47 = vpop.f32.mrf.mxu0 }
 0x984   :  { %v2603_v48 = vpop.eup %2220 }
 0x985   :  { %v1509_v50 = vsel %vm99_vm2, %v2603_v48, 0.0 }
 0x986   :  { %1510 = vadd.xlane.f32.xlu2 %v1509_v50 }
 0x98a   :  { %v1368_v51 = vpop.f32.mrf.mxu0 }
 0x992   :  { %v1371_v52 = vpop.f32.mrf.mxu0 }
 0x99a   :  { %v1669_v53 = vpop.f32.mrf.mxu0 }
 0x99b   :  { %v1675_v55 = vmul.f32 0.35355338, %v1669_v53 }
 0x99d   :  { %v1677_v26 = vsel %vm99_vm2, %v1675_v55, -inf }
 0x99e   :  { %1678 = vmax.xlane.f32.xlu1 %v1677_v26 }
 0x9a2   :  { %v1672_v35 = vpop.f32.mrf.mxu0 }
 0x9a3   :  { %v1676_v58 = vmul.f32 0.35355338, %v1672_v35 }
 0x9a5   :  { %v1680_v60 = vsel %vm99_vm2, %v1676_v58, -inf }
 0x9a6   :  { %1681 = vmax.xlane.f32.xlu1 %v1680_v60 }
 0x9a7   :  { %1575 = vxpose.xlu0.b32.start.end [1/1] (short) (narrow) %v1573_v32, 8 }
 0x9bf   :  { %1607 = vrot.lane.b32.xlu1 %v2539_v49, %s2253_s0 }
 0x9f1   :  { %v2620_v63 = vpop.xlane.xlu0 %1507 }
 0x9f2   :  { %vm1517_vm10 = vweird.f32 %v2620_v63 }
 0x9f9   :  { %v2623_v16 = vpop.xlane.xlu2 %1510 }
 0xa11   :  { %v1679_v5 = vpop.xlane.xlu1 %1678 }
 0xa12   :  { %v1683_v40 = vsub.f32 %v1675_v55, %v1679_v5 }
 0xa14   :  { %v1685_v61 = vmul.f32 1.442695, %v1683_v40 }
 0xa16   :  { %2222 = vpow2.f32 %v1685_v61 }
 0xa19   :  { %v1682_v54 = vpop.xlane.xlu1 %1681 }
 0xa1a   :  { %v1684_v0 = vsub.f32 %v1676_v58, %v1682_v54 }
 0xa1c   :  { %v2223_v3 = vpop.eup %2222  ;;  %v1687_v62 = vmul.f32 1.442695, %v1684_v0 }
 0xa1d   :  { %v1689_v8 = vsel %vm99_vm2, %v2223_v3, 0.0 }
 0xa1e   :  { %2224 = vpow2.f32 %v1687_v62  ;;  %1690 = vadd.xlane.f32.xlu1 %v1689_v8 }
 0xa24   :  { %v2225_v13 = vpop.eup %2224 }
 0xa25   :  { %v1692_v14 = vsel %vm99_vm2, %v2225_v13, 0.0 }
 0xa26   :  { %1693 = vadd.xlane.f32.xlu2 %v1692_v14  ;;  %v1521_v14 = vand.u32 2147483647, %v2620_v63 }
 0xa28   :  { %vm1522_vm12 = vcmp.eq.f32.partialorder %v1521_v14, 8.507059e+37 }
 0xa31   :  { %v1608_v1 = vpop.permute.xlu1 %1607 }
 0xa32   :  { %1628 = vmatpush.msra.mxu3 %v1608_v1 }
 0xa34   :  { %1746 = vmatpush.msrb.mxu3 %v1608_v1 }
 0xa3e   :  { %1427 = vrot.lane.b32.xlu2 %v2539_v49, %s2246_s24  ;;  %v1772_v49 = vld [vmem:[%s2813_s1 + $0x78] sm:$0xff] }
 0xa3f   :  { %1791 = vmatpush.msra.mxu2 %v1772_v49 }
 0xa46   :  { %1375 = vrot.lane.b32.xlu2 %v2583_v59, %s2249_s5  ;;  %v1771_v59 = vld [vmem:[%s2813_s1 + $0x70] sm:$0xff] }
 0xa47   :  { %1792 = vmatpush.msra.mxu2 %v1771_v59 }
 0xa49   :  { %1793 = vmatpush.msra.mxu2 %v1770_v7 }
 0xa4b   :  { %v1591_v15 = vpop.trf.xlu0  ;;  %1794 = vmatpush.msra.mxu2 %v1769_v20 }
 0xa4c   :  { %2117 = vmatmul.msk.f32.vlgmr.msra.gmra.mxu3 %vm99_vm2, %v1591_v15 }
 0xa4e   :  { %1379 = vrot.lane.b32.xlu2 %v1368_v51, %s2250_s6 }
 0xa56   :  { %1383 = vrot.lane.b32.xlu2 %v1371_v52, %s2251_s7 }
 0xa58   :  { %1394 = vxpose.xlu1.b32.start.end [1/1] (short) (narrow) %v2576_v42, 8 }
 0xa91   :  { %v1691_v17 = vpop.xlane.xlu1 %1690 }
 0xa92   :  { %2226 = vrcp.f32 %v1691_v17  ;;  %v1706_v22 = vand.u32 2147483648, %v1691_v17  ;;  %v1704_v43 = vand.u32 2147483647, %v1691_v17  ;;  %vm1700_vm14 = vweird.f32 %v1691_v17 }
 0xa94   :  { %v1707_v28 = vor.u32 1.1754944e-38, %v1706_v22  ;;  %vm1705_vm1 = vcmp.eq.f32.partialorder %v1704_v43, 8.507059e+37 }
 0xa98   :  { %v2227_v2 = vpop.eup %2226 }
 0xa99   :  { %v1696_v19 = vmul.f32 %v2227_v2, %v1691_v17  ;;  %v1694_v4 = vpop.xlane.xlu2 %1693  ;;  %vm1701_vm13 = vweird.f32 %v2227_v2 }
 0xa9a   :  { %2228 = vrcp.f32 %v1694_v4  ;;  %vm1702_vm15 = vmor %vm1700_vm14, %vm1701_vm13  ;;  %v1721_v39 = vand.u32 2147483648, %v1694_v4  ;;  %v1719_v27 = vand.u32 2147483647, %v1694_v4  ;;  %vm1715_vm4 = vweird.f32 %v1694_v4 }
 0xa9b   :  { %v1697_v21 = vsub.f32 1.0, %v1696_v19  ;;  %2230 = vrcp.f32 %v2620_v63  ;;  %vm1532_vm14 = vweird.f32 %v2623_v16 }
 0xa9c   :  { %v1722_v50 = vor.u32 1.1754944e-38, %v1721_v39  ;;  %vm1720_vm8 = vcmp.eq.f32.partialorder %v1719_v27, 8.507059e+37  ;;  %2232 = vrcp.f32 %v2623_v16 }
 0xa9d   :  { %v1698_v23 = vmul.f32 %v2227_v2, %v1697_v21 }
 0xa9f   :  { %v1699_v24 = vadd.f32 %v2227_v2, %v1698_v23 }
 0xaa0   :  { %v2229_v25 = vpop.eup %2228 }
 0xaa1   :  { %v1703_v29 = vsel %vm1702_vm15, %v2227_v2, %v1699_v24  ;;  %v1711_v30 = vmul.f32 %v2229_v25, %v1694_v4  ;;  %v1428_v32 = vpop.permute.xlu2 %1427  ;;  %vm1716_vm3 = vweird.f32 %v2229_v25  ;;  %v2231_v40 = vpop.eup %2230  ;;  %v1538_v2 = vand.u32 2147483648, %v2623_v16 }
 0xaa2   :  { %v1708_v11 = vsel %vm1705_vm1, %v1707_v28, %v1703_v29  ;;  %1448 = vmatpush.msra.mxu1 %v1428_v32  ;;  %vm1717_vm5 = vmor %vm1715_vm4, %vm1716_vm3  ;;  %v1513_v61 = vmul.f32 %v2231_v40, %v2620_v63  ;;  %v2233_v0 = vpop.eup %2232  ;;  %vm1518_vm9 = vweird.f32 %v2231_v40  ;;  %v1536_v4 = vand.u32 2147483647, %v2623_v16 }
 0xaa3   :  { %v1712_v33 = vsub.f32 1.0, %v1711_v30  ;;  %v1709_v38 = vmul.f32 %v2223_v3, %v1708_v11  ;;  %v1528_v62 = vmul.f32 %v2233_v0, %v2623_v16  ;;  %vm1519_vm11 = vmor %vm1517_vm10, %vm1518_vm9  ;;  %vm1533_vm13 = vweird.f32 %v2233_v0 }
 0xaa4   :  { %1563 = vmatpush.msrb.mxu1 %v1428_v32  ;;  %v1514_v54 = vsub.f32 1.0, %v1513_v61  ;;  %vm1534_vm15 = vmor %vm1532_vm14, %vm1533_vm13  ;;  %v1539_v20 = vor.u32 1.1754944e-38, %v1538_v2  ;;  %vm1537_vm1 = vcmp.eq.f32.partialorder %v1536_v4, 8.507059e+37  ;;  %vm123_vm3 = vcmask 326912  }
 0xaa5   :  { %v1713_v44 = vmul.f32 %v2229_v25, %v1712_v33  ;;  %2121 = vmatmul.msk.f32.vlgmr.msrb.gmra.mxu3 %vm99_vm2, %v1709_v38  ;;  %v1529_v8 = vsub.f32 1.0, %v1528_v62  ;;  %vm1252_vm4 = vcmask 130112   ;;  %vm1897_vm14 = vcmask 523264  }
 0xaa6   :  { %v1515_v3 = vmul.f32 %v2231_v40, %v1514_v54  ;;  %v1253_v30 = vsel %vm1252_vm4, %v2518_v31, 0.0 }
 0xaa7   :  { %v1714_v46 = vadd.f32 %v2229_v25, %v1713_v44  ;;  %v1530_v17 = vmul.f32 %v2233_v0, %v1529_v8  ;;  %v1254_v32 = vrot.slane %v1253_v30, 4 }
 0xaa9   :  { %v1376_v51 = vpop.permute.xlu2 %1375  ;;  %v1718_v52 = vsel %vm1717_vm5, %v2229_v25, %v1714_v46  ;;  %v1531_v7 = vadd.f32 %v2233_v0, %v1530_v17  ;;  %v1255_v38 = vadd.f32 %v1254_v32, %v1253_v30  ;;  %vm306_vm5 = vcmask 392512  }
 0xaaa   :  { %v1723_v53 = vsel %vm1720_vm8, %v1722_v50, %v1718_v52  ;;  %v1386_v35 = vsel %vm99_vm2, %v2581_v57, %v1376_v51  ;;  %v1516_v57 = vadd.f32 %v2231_v40, %v1515_v3 }
 0xaab   :  { %v1724_v55 = vmul.f32 %v2225_v13, %v1723_v53  ;;  %v1523_v13 = vand.u32 2147483648, %v2620_v63  ;;  %v1535_v63 = vsel %vm1534_vm15, %v2233_v0, %v1531_v7  ;;  %v1256_v27 = vrot.slane %v1255_v38, 2 }
 0xaac   :  { %v1520_v15 = vsel %vm1519_vm11, %v2231_v40, %v1516_v57  ;;  %v1540_v21 = vsel %vm1537_vm1, %v1539_v20, %v1535_v63  ;;  %v307_v40 = vsel %vm306_vm5, %v2304_v12, 0.0  ;;  %v1072_v0 = vsel %vm99_vm2, %v2518_v31, 0.0 }
 0xaad   :  { %2122 = vmatmul.msk.f32.gmra.mxu3 %vm99_vm2, %v1724_v55  ;;  %v1524_v49 = vor.u32 1.1754944e-38, %v1523_v13  ;;  %v1541_v22 = vmul.f32 %v2603_v48, %v1540_v21  ;;  %v515_v48 = vsel %vm123_vm3, %v2376_v10, 0.0  ;;  %v1257_v50 = vadd.f32 %v1256_v27, %v1255_v38 }
 0xaae   :  { %v516_v28 = vrot.slane %v515_v48, 4  ;;  %v308_v61 = vrot.slane %v307_v40, 4  ;;  %v1073_v3 = vrot.slane %v1072_v0, 4  ;;  %vm2011_vm15 = vcmask 326656  }
 0xaaf   :  { %v1525_v59 = vsel %vm1522_vm12, %v1524_v49, %v1520_v15  ;;  %v1258_v52 = vrot.slane %v1257_v50, 1  ;;  %vm2013_vm1 = vcmask 392192  }
 0xab0   :  { %v1526_v19 = vmul.f32 %v2597_v45, %v1525_v59  ;;  %v517_v29 = vadd.f32 %v516_v28, %v515_v48  ;;  %v309_v54 = vadd.f32 %v308_v61, %v307_v40  ;;  %v1074_v8 = vadd.f32 %v1073_v3, %v1072_v0  ;;  %v1859_v61 = vld [vmem:[%s2813_s1 + $0xb8] sm:$0xff]  ;;  %v1858_v0 = vld [vmem:[%s2813_s1 + $0xb0] sm:$0xff]  ;;  %v1857_v3 = vld [vmem:[%s2813_s1 + $0xa8] sm:$0xff] }
 0xab1   :  { %v1380_v26 = vpop.permute.xlu2 %1379  ;;  %v1259_v55 = vadd.f32 %v1258_v52, %v1257_v50 }
 0xab2   :  { %v1387_v58 = vsel %vm443_vm6, %v1386_v35, %v1380_v26  ;;  %v518_v11 = vrot.slane %v517_v29, 2  ;;  %v310_v62 = vrot.slane %v309_v54, 2  ;;  %v1075_v13 = vrot.slane %v1074_v8, 2 }
 0xab4   :  { %v519_v33 = vadd.f32 %v518_v11, %v517_v29  ;;  %v311_v57 = vadd.f32 %v310_v62, %v309_v54  ;;  %v1856_v62 = vld [vmem:[%s2813_s1 + $0xa0] sm:$0xff] }
 0xab6   :  { %v520_v44 = vrot.slane %v519_v33, 1 }
 0xab8   :  { %v521_v46 = vadd.f32 %v520_v44, %v519_v33 }
 0xab9   :  { %v1384_v60 = vpop.permute.xlu2 %1383 }
 0xaba   :  { %v1388_v5 = vsel %vm445_vm7, %v1387_v58, %v1384_v60 }
 0xabb   :  { %2123 = vmatmul.msk.f32.vlgmr.msra.gmra.mxu2 %vm24_vm0, %v1388_v5 }
 0xacf   :  { %v2659_v23 = vpop.f32.mrf.mxu3 }
 0xafc   :  { %v1410_v1 = vpop.trf.xlu1 }
 0xafd   :  { %2111 = vmatmul.msk.f32.vlgmr.msra.gmra.mxu1 %vm99_vm2, %v1410_v1  ;;  %v1076_v1 = vadd.f32 %v1075_v13, %v1074_v8 }
 0xb05   :  { %2115 = vmatmul.msk.f32.vlgmr.msrb.gmra.mxu1 %vm99_vm2, %v1526_v19 }
 0xb0d   :  { %2116 = vmatmul.msk.f32.gmra.mxu1 %vm99_vm2, %v1541_v22 }
 0xb28   :  { %v1748_v43 = vpop.f32.mrf.mxu3 }
 0xb29   :  { %1759 = vrot.lane.b32.xlu2 %v1748_v43, %s2250_s6  ;;  %v1855_v43 = vld [vmem:[%s2813_s1 + $0x98] sm:$0xff] }
 0xb2a   :  { %1883 = vmatpush.msra.mxu1 %v1855_v43  ;;  %v124_v43 = vsel %vm123_vm3, %v2304_v12, 0.0  ;;  %vm2015_vm3 = vcmask 457728  }
 0xb30   :  { %v1751_v24 = vpop.f32.mrf.mxu3 }
 0xb31   :  { %1763 = vrot.lane.b32.xlu2 %v1751_v24, %s2251_s7 }
 0xb3e   :  { %v1796_v45 = vpop.f32.mrf.mxu2 }
 0xb3f   :  { %v2664_v16 = vadd.f32 %v1796_v45, %v2486_v36  ;;  %v1633_v36 = vsel %vm1252_vm4, %v2576_v42, 0.0  ;;  %v1854_v45 = vld [vmem:[%s2813_s1 + $0x90] sm:$0xff] }
 0xb40   :  { %v1634_v39 = vrot.slane %v1633_v36, 4  ;;  %1884 = vmatpush.msra.mxu1 %v1854_v45 }
 0xb41   :  { %v1802_v25 = vsel %vm24_vm0, %v2664_v16, 0.0 }
 0xb42   :  { %1803 = vadd.xlane.f32.xlu1 %v1802_v25  ;;  %v1635_v51 = vadd.f32 %v1634_v39, %v1633_v36  ;;  %v1852_v25 = vld [vmem:[%s2813_s1 + $0x80] sm:$0xff] }
 0xb44   :  { %v1636_v53 = vrot.slane %v1635_v51, 2 }
 0xb46   :  { %v1637_v26 = vadd.f32 %v1636_v53, %v1635_v51 }
 0xb48   :  { %v1638_v35 = vrot.slane %v1637_v26, 1 }
 0xb4a   :  { %v1639_v58 = vadd.f32 %v1638_v35, %v1637_v26  ;;  %v1863_v35 = vld [vmem:[%s2813_s1 + $0xd8] sm:$0xff] }
 0xb4b   :  { %1912 = vmatpush.msrb.mxu0 %v1863_v35 }
 0xb5b   :  { %1988 = vrot.lane.b32.xlu1 %v2440_v6, %s2251_s7  ;;  %s2256_s7 = smov 40  }
 0xb63   :  { %2026 = vrot.lane.b32.xlu1 %v521_v46, %s2246_s24  ;;  %v2718_v46 = vld [vmem:[%s2813_s1 + $0xe0] sm:$0xff] }
 0xb64   :  { %v1846_v50 = vperm.slane %v2718_v46, 6  ;;  %v1849_v53 = vperm.slane %v2718_v46, 7 }
 0xb6b   :  { %2038 = vrot.lane.b32.xlu1 %v1259_v55, %s2254_s13 }
 0xb73   :  { %2046 = vrot.lane.b32.xlu1 %v1639_v58, %s2255_s14  ;;  %v1862_v58 = vld [vmem:[%s2813_s1 + $0xd0] sm:$0xff] }
 0xb74   :  { %1913 = vmatpush.msrb.mxu0 %v1862_v58 }
 0xb7a   :  { %v1450_v6 = vpop.f32.mrf.mxu1 }
 0xb82   :  { %v1565_v60 = vpop.f32.mrf.mxu1 }
 0xb83   :  { %v1760_v31 = vpop.permute.xlu2 %1759 }
 0xb8a   :  { %v1568_v5 = vpop.f32.mrf.mxu1 }
 0xb8b   :  { %1755 = vrot.lane.b32.xlu0 %v1568_v5, %s2249_s5  ;;  %v1764_v49 = vpop.permute.xlu2 %1763 }
 0xb93   :  { %1980 = vrot.lane.b32.xlu0 %v2341_v37, %s2249_s5  ;;  %v312_v37 = vrot.slane %v311_v57, 1  ;;  %s2257_s5 = smov 56  }
 0xb95   :  { %v313_v14 = vadd.f32 %v312_v37, %v311_v57 }
 0xb9b   :  { %1992 = vrot.lane.b32.xlu0 %v2595_v41, %s2254_s13  ;;  %v1077_v41 = vrot.slane %v1076_v1, 1 }
 0xb9d   :  { %v1078_v15 = vadd.f32 %v1077_v41, %v1076_v1 }
 0xba3   :  { %1996 = vrot.lane.b32.xlu0 %v2601_v47, %s2256_s7 }
 0xbab   :  { %2000 = vrot.lane.b32.xlu0 %v1450_v6, %s2255_s14  ;;  %v1861_v6 = vld [vmem:[%s2813_s1 + $0xc8] sm:$0xff] }
 0xbac   :  { %1914 = vmatpush.msrb.mxu0 %v1861_v6 }
 0xbb3   :  { %2022 = vrot.lane.b32.xlu0 %v313_v14, %s2244_s22 }
 0xbb5   :  { %v1804_v2 = vpop.xlane.xlu1 %1803 }
 0xbb6   :  { %v1808_v19 = vmul.f32 %v1804_v2, %v2455_v9 }
 0xbb8   :  { %v1810_v20 = vsub.f32 %v2664_v16, %v1808_v19  ;;  %v1853_v16 = vld [vmem:[%s2813_s1 + $0x88] sm:$0xff] }
 0xbb9   :  { %1885 = vmatpush.msra.mxu1 %v1853_v16 }
 0xbba   :  { %v1812_v22 = vmul.f32 %v1810_v20, %v1810_v20 }
 0xbbb   :  { %2034 = vrot.lane.b32.xlu0 %v1078_v15, %s2254_s13  ;;  %1886 = vmatpush.msra.mxu1 %v1852_v25 }
 0xbc3   :  { %2004 = vrot.lane.b32.xlu0 %v2659_v23, %s2257_s5  ;;  %v1814_v23 = vsel %vm24_vm0, %v1812_v22, 0.0 }
 0xbfd   :  { %v1756_v47 = vpop.permute.xlu0 %1755 }
 0xbfe   :  { %v1766_v17 = vsel %vm99_vm2, %v1565_v60, %v1756_v47  ;;  %v1860_v60 = vld [vmem:[%s2813_s1 + $0xc0] sm:$0xff] }
 0xbff   :  { %v1767_v59 = vsel %vm443_vm6, %v1766_v17, %v1760_v31  ;;  %1915 = vmatpush.msrb.mxu0 %v1860_v60  ;;  %v1864_v17 = vperm.slane %v2718_v46, 2  ;;  %v697_v60 = vsel %vm306_vm5, %v2376_v10, 0.0 }
 0xc00   :  { %v1768_v7 = vsel %vm445_vm7, %v1767_v59, %v1764_v49 }
 0xc01   :  { %2124 = vmatmul.msk.f32.gmra.mxu2 %vm24_vm0, %v1768_v7  ;;  %1916 = vmatpush.msrb.mxu0 %v1859_v61 }
 0xc03   :  { %1917 = vmatpush.msrb.mxu0 %v1858_v0 }
 0xc05   :  { %1918 = vmatpush.msrb.mxu0 %v1857_v3 }
 0xc07   :  { %1919 = vmatpush.msrb.mxu0 %v1856_v62 }
 0xc84   :  { %v1799_v4 = vpop.f32.mrf.mxu2 }
 0xc85   :  { %v1800_v63 = vadd.f32 %v1799_v4, %v2548_v56 }
 0xc87   :  { %v1805_v21 = vsel %vm24_vm0, %v1800_v63, 0.0 }
 0xc88   :  { %1806 = vadd.xlane.f32.xlu2 %v1805_v21 }
 0xc90   :  { %1815 = vadd.xlane.f32.xlu2 %v1814_v23 }
 0xcfb   :  { %v1807_v24 = vpop.xlane.xlu2 %1806 }
 0xcfc   :  { %v1809_v56 = vmul.f32 %v1807_v24, %v2455_v9  ;;  %v125_v24 = vrot.slane %v124_v43, 4 }
 0xcfe   :  { %v1811_v48 = vsub.f32 %v1800_v63, %v1809_v56  ;;  %v1896_v63 = vperm.slane %v2718_v46, 3  ;;  %v126_v45 = vadd.f32 %v125_v24, %v124_v43 }
 0xd00   :  { %v1813_v28 = vmul.f32 %v1811_v48, %v1811_v48  ;;  %v127_v56 = vrot.slane %v126_v45, 2 }
 0xd02   :  { %v1817_v29 = vsel %vm24_vm0, %v1813_v28, 0.0  ;;  %v128_v16 = vadd.f32 %v127_v56, %v126_v45  ;;  %v1981_v28 = vpop.permute.xlu0 %1980 }
 0xd03   :  { %1818 = vadd.xlane.f32.xlu2 %v1817_v29  ;;  %v1816_v30 = vpop.xlane.xlu2 %1815  ;;  %v2007_v46 = vsel %vm99_vm2, %v2333_v34, %v1981_v28 }
 0xd04   :  { %v1820_v32 = vmul.f32 %v1816_v30, %v2455_v9  ;;  %v129_v25 = vrot.slane %v128_v16, 1 }
 0xd06   :  { %v1822_v11 = vadd.f32 1e-05, %v1820_v32 }
 0xd08   :  { %2234 = vrsqrt.f32 %v1822_v11  ;;  %vm1830_vm9 = vweird.f32 %v1822_v11 }
 0xd0a   :  { %v1993_v29 = vpop.permute.xlu0 %1992 }
 0xd0e   :  { %v2235_v33 = vpop.eup %2234 }
 0xd0f   :  { %v1825_v38 = vmul.f32 %v2235_v33, %v1822_v11  ;;  %vm1831_vm8 = vweird.f32 %v2235_v33 }
 0xd10   :  { %vm1832_vm10 = vmor %vm1830_vm9, %vm1831_vm8  ;;  %vm2061_vm9 = vcmask 516096  }
 0xd11   :  { %v1826_v36 = vmul.f32 %v2235_v33, %v1825_v38 }
 0xd12   :  { %v1997_v30 = vpop.permute.xlu0 %1996 }
 0xd13   :  { %v1827_v39 = vmul.f32 0.5, %v1826_v36 }
 0xd15   :  { %v1828_v44 = vsub.f32 1.5, %v1827_v39 }
 0xd17   :  { %v1829_v27 = vmul.f32 %v2235_v33, %v1828_v44 }
 0xd19   :  { %v1833_v51 = vsel %vm1832_vm10, %v2235_v33, %v1829_v27 }
 0xd1a   :  { %v1844_v52 = vmul.f32 %v1833_v51, %v1810_v20  ;;  %v2001_v32 = vpop.permute.xlu0 %2000  ;;  %v1989_v51 = vpop.permute.xlu1 %1988 }
 0xd1c   :  { %v1847_v55 = vmul.f32 %v1846_v50, %v1844_v52 }
 0xd1e   :  { %v1850_v26 = vadd.f32 %v1849_v53, %v1847_v55 }
 0xd20   :  { %2125 = vmatmul.msk.f32.vlgmr.msra.gmra.mxu1 %vm24_vm0, %v1850_v26 }
 0xd22   :  { %v2759_v11 = vpop.permute.xlu0 %2022 }
 0xd2a   :  { %v2762_v38 = vpop.permute.xlu0 %2034 }
 0xd32   :  { %v2005_v58 = vpop.permute.xlu0 %2004 }
 0xd76   :  { %v1819_v5 = vpop.xlane.xlu2 %1818 }
 0xd77   :  { %v1821_v40 = vmul.f32 %v1819_v5, %v2455_v9 }
 0xd79   :  { %v1823_v54 = vadd.f32 1e-05, %v1821_v40  ;;  %v698_v40 = vrot.slane %v697_v60, 4 }
 0xd7b   :  { %2236 = vrsqrt.f32 %v1823_v54  ;;  %vm1840_vm12 = vweird.f32 %v1823_v54  ;;  %v699_v61 = vadd.f32 %v698_v40, %v697_v60 }
 0xd81   :  { %v2237_v57 = vpop.eup %2236 }
 0xd82   :  { %v1835_v8 = vmul.f32 %v2237_v57, %v1823_v54  ;;  %vm1841_vm11 = vweird.f32 %v2237_v57  ;;  %v700_v54 = vrot.slane %v699_v61, 2 }
 0xd83   :  { %vm1842_vm13 = vmor %vm1840_vm12, %vm1841_vm11 }
 0xd84   :  { %v1836_v37 = vmul.f32 %v2237_v57, %v1835_v8  ;;  %v701_v0 = vadd.f32 %v700_v54, %v699_v61 }
 0xd86   :  { %v1837_v13 = vmul.f32 0.5, %v1836_v37  ;;  %v702_v3 = vrot.slane %v701_v0, 1 }
 0xd88   :  { %v1838_v14 = vsub.f32 1.5, %v1837_v13  ;;  %v703_v62 = vadd.f32 %v702_v3, %v701_v0 }
 0xd8a   :  { %v1839_v1 = vmul.f32 %v2237_v57, %v1838_v14 }
 0xd8c   :  { %v1843_v41 = vsel %vm1842_vm13, %v2237_v57, %v1839_v1 }
 0xd8d   :  { %v1845_v15 = vmul.f32 %v1843_v41, %v1811_v48  ;;  %v130_v48 = vadd.f32 %v129_v25, %v128_v16 }
 0xd8f   :  { %v1848_v31 = vmul.f32 %v1846_v50, %v1845_v15 }
 0xd91   :  { %v1851_v47 = vadd.f32 %v1849_v53, %v1848_v31 }
 0xd93   :  { %2126 = vmatmul.msk.f32.gmra.mxu1 %vm24_vm0, %v1851_v47 }
 0xd9d   :  { %v1888_v49 = vpop.f32.mrf.mxu1 }
 0xd9e   :  { %v1889_v59 = vadd.f32 %v1888_v49, %v1864_v17 }
 0xda0   :  { %v1894_v7 = vmax.f32 %v1889_v59, 0.0 }
 0xda2   :  { %2127 = vmatmul.msk.f32.vlgmr.msrb.gmra.mxu0 %vm1897_vm14, %v1894_v7 }
 0xe10   :  { %v1891_v2 = vpop.f32.mrf.mxu1 }
 0xe11   :  { %v1892_v19 = vadd.f32 %v1891_v2, %v1864_v17  ;;  %v1453_v17 = vsel %vm99_vm2, %v2576_v42, 0.0  ;;  %v18_v2 = vld [vmem:[%s2813_s1 + $0xe8] sm:$0x3] }
 0xe12   :  { %v1454_v7 = vrot.slane %v1453_v17, 4 }
 0xe13   :  { %v1895_v4 = vmax.f32 %v1892_v19, 0.0 }
 0xe15   :  { %2128 = vmatmul.msk.f32.gmra.mxu0 %vm1897_vm14, %v1895_v4 }
 0xe1f   :  { %v1921_v20 = vpop.f32.mrf.mxu0 }
 0xe20   :  { %v1922_v21 = vadd.f32 %v1921_v20, %v1896_v63 }
 0xe22   :  { %v1927_v22 = vadd.f32 %v1922_v21, %v1850_v26  ;;  %v1455_v21 = vadd.f32 %v1454_v7, %v1453_v17 }
 0xe24   :  { %v1929_v23 = vsel %vm24_vm0, %v1927_v22, 0.0  ;;  %v1456_v43 = vrot.slane %v1455_v21, 2 }
 0xe25   :  { %1930 = vadd.xlane.f32.xlu2 %v1929_v23 }
 0xe26   :  { %v1457_v56 = vadd.f32 %v1456_v43, %v1455_v21 }
 0xe28   :  { %v1458_v16 = vrot.slane %v1457_v56, 1 }
 0xe2a   :  { %v1459_v25 = vadd.f32 %v1458_v16, %v1457_v56 }
 0xe3d   :  { %1984 = vrot.lane.b32.xlu2 %v2467_v18, %s2250_s6 }
 0xe45   :  { %2018 = vrot.lane.b32.xlu2 %v130_v48, %s2244_s22  ;;  %v2027_v48 = vpop.permute.xlu1 %2026 }
 0xe92   :  { %v1924_v39 = vpop.f32.mrf.mxu0 }
 0xe93   :  { %v1925_v27 = vadd.f32 %v1924_v39, %v1896_v63  ;;  %v1973_v63 = vperm.slane %v18_v2, 0 }
 0xe95   :  { %v1928_v26 = vadd.f32 %v1925_v27, %v1851_v47 }
 0xe97   :  { %v1932_v5 = vsel %vm24_vm0, %v1928_v26, 0.0 }
 0xe98   :  { %v1931_v33 = vpop.xlane.xlu2 %1930 }
 0xe99   :  { %v1935_v12 = vmul.f32 %v1931_v33, %v2455_v9 }
 0xe9b   :  { %v1937_v36 = vsub.f32 %v1927_v22, %v1935_v12  ;;  %v1976_v22 = vperm.slane %v18_v2, 1 }
 0xe9d   :  { %v1939_v44 = vmul.f32 %v1937_v36, %v1937_v36 }
 0xe9f   :  { %v1941_v18 = vsel %vm24_vm0, %v1939_v44, 0.0 }
 0xea0   :  { %v1985_v50 = vpop.permute.xlu2 %1984  ;;  %1942 = vadd.xlane.f32.xlu2 %v1941_v18 }
 0xea1   :  { %v2008_v52 = vsel %vm443_vm6, %v2007_v46, %v1985_v50 }
 0xea2   :  { %v2009_v53 = vsel %vm445_vm7, %v2008_v52, %v1989_v51 }
 0xea3   :  { %v2010_v55 = vsel %vm24_vm0, %v2009_v53, %v1993_v29 }
 0xea4   :  { %v2012_v35 = vsel %vm2011_vm15, %v2010_v55, %v1997_v30  ;;  %v2039_v30 = vpop.permute.xlu1 %2038 }
 0xea5   :  { %v2014_v6 = vsel %vm2013_vm1, %v2012_v35, %v2001_v32 }
 0xea6   :  { %v2016_v34 = vsel %vm2015_vm3, %v2014_v6, %v2005_v58 }
 0xea7   :  { %2060 = vst.msk [vmem:[%s2815_s2 + $0x10] sm:$0xff] %vm1897_vm14, %v2016_v34 }
 0xea8   :  { %1933 = vadd.xlane.f32.xlu2 %v1932_v5  ;;  %v2019_v57 = vpop.permute.xlu2 %2018 }
 0xea9   :  { %v2049_v29 = vsel %vm99_vm2, %v2019_v57, %v2759_v11 }
 0xeaa   :  { %v2050_v33 = vsel %vm443_vm6, %v2049_v29, %v2027_v48 }
 0xeac   :  { %v2047_v46 = vpop.permute.xlu1 %2046 }
 0xec0   :  { %2030 = vrot.lane.b32.xlu2 %v703_v62, %s2246_s24 }
 0xf13   :  { %v1943_v8 = vpop.xlane.xlu2 %1942 }
 0xf14   :  { %v1947_v10 = vmul.f32 %v1943_v8, %v2455_v9 }
 0xf16   :  { %v1949_v37 = vadd.f32 1e-05, %v1947_v10 }
 0xf18   :  { %2238 = vrsqrt.f32 %v1949_v37  ;;  %vm1957_vm5 = vweird.f32 %v1949_v37 }
 0xf1b   :  { %v1934_v13 = vpop.xlane.xlu2 %1933 }
 0xf1c   :  { %v1936_v14 = vmul.f32 %v1934_v13, %v2455_v9 }
 0xf1e   :  { %v2239_v1 = vpop.eup %2238  ;;  %v1938_v41 = vsub.f32 %v1928_v26, %v1936_v14 }
 0xf1f   :  { %v1952_v15 = vmul.f32 %v2239_v1, %v1949_v37  ;;  %vm1958_vm4 = vweird.f32 %v2239_v1 }
 0xf20   :  { %v1940_v31 = vmul.f32 %v1938_v41, %v1938_v41  ;;  %vm1959_vm8 = vmor %vm1957_vm5, %vm1958_vm4 }
 0xf21   :  { %v1953_v47 = vmul.f32 %v2239_v1, %v1952_v15 }
 0xf22   :  { %v1944_v49 = vsel %vm24_vm0, %v1940_v31, 0.0 }
 0xf23   :  { %v1954_v59 = vmul.f32 0.5, %v1953_v47  ;;  %1945 = vadd.xlane.f32.xlu2 %v1944_v49  ;;  %v2031_v28 = vpop.permute.xlu2 %2030 }
 0xf25   :  { %v1955_v19 = vsub.f32 1.5, %v1954_v59 }
 0xf27   :  { %v1956_v4 = vmul.f32 %v2239_v1, %v1955_v19 }
 0xf29   :  { %v1960_v20 = vsel %vm1959_vm8, %v2239_v1, %v1956_v4 }
 0xf2a   :  { %v1971_v23 = vmul.f32 %v1960_v20, %v1937_v36  ;;  %v2051_v36 = vsel %vm445_vm7, %v2050_v33, %v2031_v28 }
 0xf2b   :  { %v2052_v44 = vsel %vm24_vm0, %v2051_v36, %v2762_v38 }
 0xf2c   :  { %v1974_v42 = vmul.f32 %v1973_v63, %v1971_v23  ;;  %v2053_v27 = vsel %vm2011_vm15, %v2052_v44, %v2039_v30 }
 0xf2e   :  { %v1977_v24 = vadd.f32 %v1976_v22, %v1974_v42 }
 0xf30   :  { %v2056_v45 = vsel %vm24_vm0, %v1977_v24, 0.0 }
 0xf31   :  { %2058 = vst.msk [vmem:[%s2815_s2] sm:$0xff] %vm1897_vm14, %v2056_v45 }
 0xf3b   :  { %2042 = vrot.lane.b32.xlu2 %v1459_v25, %s2255_s14 }
 0xf96   :  { %v1946_v32 = vpop.xlane.xlu2 %1945 }
 0xf97   :  { %v1948_v12 = vmul.f32 %v1946_v32, %v2455_v9 }
 0xf99   :  { %v1950_v39 = vadd.f32 1e-05, %v1948_v12 }
 0xf9b   :  { %2240 = vrsqrt.f32 %v1950_v39  ;;  %vm1967_vm6 = vweird.f32 %v1950_v39 }
 0xf9e   :  { %v2043_v18 = vpop.permute.xlu2 %2042 }
 0xf9f   :  { %v2054_v11 = vsel %vm2013_vm1, %v2053_v27, %v2043_v18 }
 0xfa0   :  { %v2055_v50 = vsel %vm2015_vm3, %v2054_v11, %v2047_v46 }
 0xfa1   :  { %v2241_v51 = vpop.eup %2240  ;;  %2062 = vst.msk [vmem:[%s2815_s2 + $0x18] sm:$0x1] %vm2061_vm9, %v2055_v50 }
 0xfa2   :  { %v1962_v9 = vmul.f32 %v2241_v51, %v1950_v39  ;;  %vm1968_vm2 = vweird.f32 %v2241_v51 }
 0xfa3   :  { %vm1969_vm7 = vmor %vm1967_vm6, %vm1968_vm2 }
 0xfa4   :  { %v1963_v52 = vmul.f32 %v2241_v51, %v1962_v9 }
 0xfa6   :  { %v1964_v53 = vmul.f32 0.5, %v1963_v52 }
 0xfa8   :  { %v1965_v55 = vsub.f32 1.5, %v1964_v53 }
 0xfaa   :  { %v1966_v38 = vmul.f32 %v2241_v51, %v1965_v55 }
 0xfac   :  { %v1970_v26 = vsel %vm1969_vm7, %v2241_v51, %v1966_v38 }
 0xfad   :  { %v1972_v35 = vmul.f32 %v1970_v26, %v1938_v41 }
 0xfaf   :  { %v1975_v58 = vmul.f32 %v1973_v63, %v1972_v35 }
 0xfb1   :  { %v1978_v6 = vadd.f32 %v1976_v22, %v1975_v58 }
 0xfb3   :  { %v2057_v34 = vsel %vm24_vm0, %v1978_v6, 0.0 }
 0xfb4   :  { %2059 = vst.msk [vmem:[%s2815_s2 + $0x8] sm:$0xff] %vm1897_vm14, %v2057_v34 }

</bundles_post_ra>
